<compile_context>
chip_gen: v6e
topology: v6e:2x2x1
jax: 0.10.0
libtpu: 0.0.40
codegen_flags: <defaults>
</compile_context>

<pallas_src>
import jax
import jax.numpy as jnp
from jax.experimental import pallas as pl
from jax.experimental.pallas import tpu as pltpu

EPS = 1e-5  # nn.BatchNorm2d default eps


# ------------------------------ solver kernel ------------------------------ #

def make_solver_kernel(*, z_dim, x_dim, c_out, R, Tc, T, dt):
    inv_R = 1.0 / R

    def kernel(dxi_ref, u0_ref, wl_ref, bl_ref,
               wfg_ref, g_ref, bt_ref,
               w1_ref, b1_ref, w2_ref, b2_ref,
               ys_ref, z_state):
        tc = pl.program_id(0)

        # ---- lift (Linear u_dim -> z_dim), channel-first: z0 = W u0 + b ----
        @pl.when(tc == 0)
        def _():
            z_state[...] = (jnp.dot(wl_ref[...], u0_ref[...],
                                    preferred_element_type=jnp.float32)
                            + bl_ref[...])

        # Hoist weight loads out of the unrolled time loop (JAX does not CSE
        # broadcast_in_dim; per-channel params stay as (c, 1) columns and
        # broadcast over lanes at use-time).
        wfg = wfg_ref[...]                                        # (c_out, z_dim)
        gamma = g_ref[...]                                        # (c_out, 1)
        beta = bt_ref[...]                                        # (c_out, 1)
        w1 = w1_ref[...]
        b1 = b1_ref[...]
        w2 = w2_ref[...]
        b2 = b2_ref[...]

        for s in range(Tc):
            z = z_state[...]                                      # (z_dim, R)

            # ---- fused readout: y_t = W2 relu(W1 z_t + b1) + b2 ----
            hid = jnp.maximum(
                jnp.dot(w1, z, preferred_element_type=jnp.float32) + b1, 0.0)
            y = jnp.dot(w2, hid, preferred_element_type=jnp.float32) + b2
            ys_ref[s] = y.astype(ys_ref.dtype)                    # (u_dim, R)

            t_glob = tc * Tc + s

            # ---- one explicit-Euler CDE step (skipped on last/padded steps) ----
            @pl.when(t_glob < T - 1)
            def _():
                # Combined [F | G] 1x1 conv as a single matmul.  The conv bias
                # is omitted: training-mode BN over all B*H*W rows cancels any
                # per-channel bias exactly.
                h = jnp.dot(wfg, z, preferred_element_type=jnp.float32)
                # BatchNorm2d (training mode): per-channel stats over the lane
                # dimension (all B*H*W rows), biased variance (one pass).
                m1 = jnp.sum(h, axis=1, keepdims=True) * inv_R    # (c_out, 1)
                m2 = jnp.sum(h * h, axis=1, keepdims=True) * inv_R
                var = m2 - m1 * m1
                scale = gamma * jax.lax.rsqrt(var + EPS)          # (c_out, 1)
                shift = beta - m1 * scale                         # (c_out, 1)
                a = jnp.tanh(h * scale + shift)                   # (c_out, R)
                dxi = dxi_ref[s]                                  # (x_dim, R)
                drift = a[0:z_dim, :]                             # F(z)
                for j in range(x_dim):                            # + sum_j G_j dxi_j
                    gj = a[(1 + j) * z_dim:(2 + j) * z_dim, :]
                    drift = drift + gj * dxi[j:j + 1, :]
                z_state[...] = z + dt * drift

    return kernel


def cpde_solve_fused(dxi, u_cf, w_lift, b_lift, w_fg, g_fg, bt_fg,
                     w1, b1, w2, b2, *, dt, T, Tc):
    """dxi: (T_pad, x_dim, R); u_cf: (u_dim, R).  Returns ys: (T_pad, u_dim, R)."""
    T_pad, x_dim, R = dxi.shape
    z_dim, u_dim = w_lift.shape
    c_out = w_fg.shape[0]
    hidden = w1.shape[0]
    n_chunks = T_pad // Tc

    kernel = make_solver_kernel(z_dim=z_dim, x_dim=x_dim, c_out=c_out,
                                R=R, Tc=Tc, T=T, dt=dt)
    res = lambda t: (0, 0)   # resident (constant-block) params
    return pl.pallas_call(
        kernel,
        out_shape=jax.ShapeDtypeStruct((T_pad, u_dim, R), jnp.float32),
        grid=(n_chunks,),
        in_specs=[
            pl.BlockSpec((Tc, x_dim, R), lambda t: (t, 0, 0)),    # dxi chunk
            pl.BlockSpec((u_dim, R), res),                        # u0 channel-first
            pl.BlockSpec((z_dim, u_dim), res),                    # W_lift
            pl.BlockSpec((z_dim, 1), res),                        # b_lift
            pl.BlockSpec((c_out, z_dim), res),                    # W_[F|G]
            pl.BlockSpec((c_out, 1), res),                        # BN gamma
            pl.BlockSpec((c_out, 1), res),                        # BN beta
            pl.BlockSpec((hidden, z_dim), res),                   # readout W1
            pl.BlockSpec((hidden, 1), res),                       # readout b1
            pl.BlockSpec((u_dim, hidden), res),                   # readout W2
            pl.BlockSpec((u_dim, 1), res),                        # readout b2
        ],
        out_specs=pl.BlockSpec((Tc, u_dim, R), lambda t: (t, 0, 0)),
        scratch_shapes=[pltpu.VMEM((z_dim, R), jnp.float32)],     # latent state
        compiler_params=pltpu.CompilerParams(
            dimension_semantics=("arbitrary",)),                  # time is sequential
    )(dxi, u_cf, w_lift, b_lift, w_fg, g_fg, bt_fg, w1, b1, w2, b2)


# -------------------------------- parameters -------------------------------- #

def init_params(key, u_dim, x_dim, z_dim, hidden=128, scale=0.3):
    ks = jax.random.split(key, 10)
    p = {}
    # lift: nn.Linear(u_dim, z_dim)  -> weight (z_dim, u_dim), bias (z_dim, 1)
    p["w_lift"] = scale * jax.random.normal(ks[0], (z_dim, u_dim), jnp.float32)
    p["b_lift"] = scale * jax.random.normal(ks[1], (z_dim, 1), jnp.float32)
    # F: Conv2d(z_dim, z_dim, 1)
    wf = scale * jax.random.normal(ks[2], (z_dim, z_dim), jnp.float32)
    bf = scale * jax.random.normal(ks[3], (z_dim, 1), jnp.float32)
    gf = jnp.ones((z_dim, 1), jnp.float32)
    btf = jnp.zeros((z_dim, 1), jnp.float32)
    # G: Conv2d(z_dim, z_dim*x_dim, 1), PyTorch output-channel order c = zi*x_dim + xj
    wg = scale * jax.random.normal(ks[4], (z_dim * x_dim, z_dim), jnp.float32)
    bg = scale * jax.random.normal(ks[5], (z_dim * x_dim, 1), jnp.float32)
    gg = jnp.ones((z_dim * x_dim, 1), jnp.float32)
    btg = jnp.zeros((z_dim * x_dim, 1), jnp.float32)
    # permute G rows to (xj, zi) grouping (matches .view(B, z_dim, x_dim, H, W))
    perm = (jnp.arange(z_dim)[None, :] * x_dim
            + jnp.arange(x_dim)[:, None]).reshape(-1)
    wg, bg, gg, btg = wg[perm], bg[perm], gg[perm], btg[perm]
    # fuse F and G into one matmul / one BN
    p["w_fg"] = jnp.concatenate([wf, wg], axis=0)      # (z_dim*(1+x_dim), z_dim)
    p["b_fg"] = jnp.concatenate([bf, bg], axis=0)      # kept for fidelity; exact
    #   no-op under training-mode BN, so it is not passed into the kernel.
    p["g_fg"] = jnp.concatenate([gf, gg], axis=0)
    p["bt_fg"] = jnp.concatenate([btf, btg], axis=0)
    # readout: Linear(z_dim, 128) -> ReLU -> Linear(128, u_dim)
    p["w1"] = scale * jax.random.normal(ks[6], (hidden, z_dim), jnp.float32)
    p["b1"] = scale * jax.random.normal(ks[7], (hidden, 1), jnp.float32)
    p["w2"] = scale * jax.random.normal(ks[8], (u_dim, hidden), jnp.float32)
    p["b2"] = scale * jax.random.normal(ks[9], (u_dim, 1), jnp.float32)
    return p


# ---------------------------------- forward --------------------------------- #

def neural_cpde_forward(u0, xi, params, dt, tc_time=8):
    """u0: (B, u_dim, H, W); xi: (B, x_dim, H, W, T) -> ys: (B, u_dim, H, W, T)"""
    B, u_dim, H, W = u0.shape
    _, x_dim, _, _, T = xi.shape
    R = B * H * W

    # channel-first glue (layout only; no compute)
    u_cf = u0.transpose(1, 0, 2, 3).reshape(u_dim, R)
    xi_cf = xi.transpose(4, 1, 0, 2, 3).reshape(T, x_dim, R)

    # time chunking (pad T up to a multiple of Tc; padded increments are zero)
    Tc = max(1, min(tc_time, T))
    n_chunks = -(-T // Tc)
    T_pad = n_chunks * Tc

    dxi = xi_cf[1:] - xi_cf[:-1]                                   # (T-1, x_dim, R)
    dxi = jnp.concatenate(
        [dxi, jnp.zeros((T_pad - (T - 1), x_dim, R), xi_cf.dtype)], axis=0)

    ys_cf = cpde_solve_fused(
        dxi, u_cf,
        params["w_lift"], params["b_lift"],
        params["w_fg"], params["g_fg"], params["bt_fg"],
        params["w1"], params["b1"], params["w2"], params["b2"],
        dt=dt, T=T, Tc=Tc)                                         # (T_pad, u_dim, R)

    ys = (ys_cf[:T]
          .reshape(T, u_dim, B, H, W)
          .transpose(2, 1, 3, 4, 0))                               # (B, u, H, W, T)
    return ys


if __name__ == "__main__":
    B, u_dim, x_dim, z_dim = 2, 4, 2, 8
    H = W = 8
    T = 6
    dt = 1.0 / (T - 1)

    key = jax.random.PRNGKey(0)
    k_u, k_xi, k_p = jax.random.split(key, 3)

    u0 = jax.random.normal(k_u, (B, u_dim, H, W), jnp.float32)
    xi = 0.1 * jax.random.normal(k_xi, (B, x_dim, H, W, T), jnp.float32)
    params = init_params(k_p, u_dim, x_dim, z_dim)

    ys = neural_cpde_forward(u0, xi, params, dt)
    ys = jax.block_until_ready(ys)

    assert ys.shape == (B, u_dim, H, W, T), ys.shape
    assert bool(jnp.all(jnp.isfinite(ys)))
    print("KERNEL_OK")
</pallas_src>

<mosaic_0001>
module attributes {stable_mosaic.version = 11 : i64} {
  func.func @kernel(%arg0: i32, %arg1: memref<6x2x128xf32, #tpu.memory_space<vmem>>, %arg2: memref<4x128xf32, #tpu.memory_space<vmem>>, %arg3: memref<8x4xf32, #tpu.memory_space<vmem>>, %arg4: memref<8x1xf32, #tpu.memory_space<vmem>>, %arg5: memref<24x8xf32, #tpu.memory_space<vmem>>, %arg6: memref<24x1xf32, #tpu.memory_space<vmem>>, %arg7: memref<24x1xf32, #tpu.memory_space<vmem>>, %arg8: memref<128x8xf32, #tpu.memory_space<vmem>>, %arg9: memref<128x1xf32, #tpu.memory_space<vmem>>, %arg10: memref<4x128xf32, #tpu.memory_space<vmem>>, %arg11: memref<4x1xf32, #tpu.memory_space<vmem>>, %arg12: memref<6x4x128xf32, #tpu.memory_space<vmem>>, %arg13: memref<8x128xf32, #tpu.memory_space<vmem>>) attributes {dimension_semantics = [#tpu.dimension_semantics<arbitrary>], iteration_bounds = array<i64: 1>, scalar_prefetch = 0 : i64, scratch_operands = 1 : i64, tpu.core_type = #tpu.core_type<tc>, window_params = [{transform_indices = @transform_0, window_bounds = array<i64: 6, 2, 128>}, {pipeline_mode = #tpu.pipeline_mode<synchronous>, transform_indices = @transform_1, window_bounds = array<i64: 4, 128>}, {pipeline_mode = #tpu.pipeline_mode<synchronous>, transform_indices = @transform_2, window_bounds = array<i64: 8, 4>}, {pipeline_mode = #tpu.pipeline_mode<synchronous>, transform_indices = @transform_3, window_bounds = array<i64: 8, 1>}, {pipeline_mode = #tpu.pipeline_mode<synchronous>, transform_indices = @transform_4, window_bounds = array<i64: 24, 8>}, {pipeline_mode = #tpu.pipeline_mode<synchronous>, transform_indices = @transform_5, window_bounds = array<i64: 24, 1>}, {pipeline_mode = #tpu.pipeline_mode<synchronous>, transform_indices = @transform_6, window_bounds = array<i64: 24, 1>}, {pipeline_mode = #tpu.pipeline_mode<synchronous>, transform_indices = @transform_7, window_bounds = array<i64: 128, 8>}, {pipeline_mode = #tpu.pipeline_mode<synchronous>, transform_indices = @transform_8, window_bounds = array<i64: 128, 1>}, {pipeline_mode = #tpu.pipeline_mode<synchronous>, transform_indices = @transform_9, window_bounds = array<i64: 4, 128>}, {pipeline_mode = #tpu.pipeline_mode<synchronous>, transform_indices = @transform_10, window_bounds = array<i64: 4, 1>}, {transform_indices = @transform_11, window_bounds = array<i64: 6, 4, 128>}]} {
    %c0_i32 = arith.constant 0 : i32
    %0 = arith.cmpi eq, %arg0, %c0_i32 : i32
    %1 = arith.extui %0 : i1 to i32
    %c0_i32_0 = arith.constant 0 : i32
    %2 = arith.cmpi ne, %1, %c0_i32_0 : i32
    scf.if %2 {
      %c0_74 = arith.constant 0 : index
      %c0_75 = arith.constant 0 : index
      %112 = vector.load %arg3[%c0_74, %c0_75] : memref<8x4xf32, #tpu.memory_space<vmem>>, vector<8x4xf32>
      %c0_76 = arith.constant 0 : index
      %c0_77 = arith.constant 0 : index
      %113 = vector.load %arg2[%c0_76, %c0_77] : memref<4x128xf32, #tpu.memory_space<vmem>>, vector<4x128xf32>
      %cst_78 = arith.constant dense<0.000000e+00> : vector<8x128xf32>
      %114 = tpu.matmul %112, %113, %cst_78 {dimension_numbers = #tpu.dot_dimension_numbers<[1], [0], [0], [1], [0, 0, 1, 1], [], []>} : vector<8x4xf32>, vector<4x128xf32>, vector<8x128xf32> -> vector<8x128xf32>
      %c0_79 = arith.constant 0 : index
      %c0_80 = arith.constant 0 : index
      %115 = vector.load %arg4[%c0_79, %c0_80] : memref<8x1xf32, #tpu.memory_space<vmem>>, vector<8x1xf32>
      %116 = vector.broadcast %115 : vector<8x1xf32> to vector<8x128xf32>
      %117 = arith.addf %114, %116 : vector<8x128xf32>
      %c0_81 = arith.constant 0 : index
      %c0_82 = arith.constant 0 : index
      %118 = vector.load %arg13[%c0_81, %c0_82] : memref<8x128xf32, #tpu.memory_space<vmem>>, vector<8x128xf32>
      tpu.vector_store %arg13[%c0_81, %c0_82], %117 {strides = array<i32>} : memref<8x128xf32, #tpu.memory_space<vmem>>, vector<8x128xf32>,
    } else {
    }
    %c0 = arith.constant 0 : index
    %c0_1 = arith.constant 0 : index
    %3 = vector.load %arg5[%c0, %c0_1] : memref<24x8xf32, #tpu.memory_space<vmem>>, vector<24x8xf32>
    %c0_2 = arith.constant 0 : index
    %c0_3 = arith.constant 0 : index
    %4 = vector.load %arg6[%c0_2, %c0_3] : memref<24x1xf32, #tpu.memory_space<vmem>>, vector<24x1xf32>
    %c0_4 = arith.constant 0 : index
    %c0_5 = arith.constant 0 : index
    %5 = vector.load %arg7[%c0_4, %c0_5] : memref<24x1xf32, #tpu.memory_space<vmem>>, vector<24x1xf32>
    %c0_6 = arith.constant 0 : index
    %c0_7 = arith.constant 0 : index
    %6 = vector.load %arg8[%c0_6, %c0_7] : memref<128x8xf32, #tpu.memory_space<vmem>>, vector<128x8xf32>
    %c0_8 = arith.constant 0 : index
    %c0_9 = arith.constant 0 : index
    %7 = vector.load %arg9[%c0_8, %c0_9] : memref<128x1xf32, #tpu.memory_space<vmem>>, vector<128x1xf32>
    %c0_10 = arith.constant 0 : index
    %c0_11 = arith.constant 0 : index
    %8 = vector.load %arg10[%c0_10, %c0_11] : memref<4x128xf32, #tpu.memory_space<vmem>>, vector<4x128xf32>
    %c0_12 = arith.constant 0 : index
    %c0_13 = arith.constant 0 : index
    %9 = vector.load %arg11[%c0_12, %c0_13] : memref<4x1xf32, #tpu.memory_space<vmem>>, vector<4x1xf32>
    %c0_14 = arith.constant 0 : index
    %c0_15 = arith.constant 0 : index
    %10 = vector.load %arg13[%c0_14, %c0_15] : memref<8x128xf32, #tpu.memory_space<vmem>>, vector<8x128xf32>
    %cst = arith.constant dense<0.000000e+00> : vector<128x128xf32>
    %11 = tpu.matmul %6, %10, %cst {dimension_numbers = #tpu.dot_dimension_numbers<[1], [0], [0], [1], [0, 0, 1, 1], [], []>} : vector<128x8xf32>, vector<8x128xf32>, vector<128x128xf32> -> vector<128x128xf32>
    %12 = vector.broadcast %7 : vector<128x1xf32> to vector<128x128xf32>
    %13 = arith.addf %11, %12 : vector<128x128xf32>
    %cst_16 = arith.constant 0.000000e+00 : f32
    %14 = vector.broadcast %cst_16 : f32 to vector<128x128xf32>
    %15 = arith.maximumf %13, %14 : vector<128x128xf32>
    %cst_17 = arith.constant dense<0.000000e+00> : vector<4x128xf32>
    %16 = tpu.matmul %8, %15, %cst_17 {dimension_numbers = #tpu.dot_dimension_numbers<[1], [0], [0], [1], [0, 0, 1, 1], [], []>} : vector<4x128xf32>, vector<128x128xf32>, vector<4x128xf32> -> vector<4x128xf32>
    %17 = vector.broadcast %9 : vector<4x1xf32> to vector<4x128xf32>
    %18 = arith.addf %16, %17 : vector<4x128xf32>
    %c0_18 = arith.constant 0 : index
    %c0_19 = arith.constant 0 : index
    %c0_20 = arith.constant 0 : index
    %19 = vector.load %arg12[%c0_18, %c0_19, %c0_20] : memref<6x4x128xf32, #tpu.memory_space<vmem>>, vector<1x4x128xf32>
    %20 = vector.shape_cast %19 : vector<1x4x128xf32> to vector<4x128xf32>
    %21 = vector.shape_cast %18 : vector<4x128xf32> to vector<1x4x128xf32>
    tpu.vector_store %arg12[%c0_18, %c0_19, %c0_20], %21 {strides = array<i32>} : memref<6x4x128xf32, #tpu.memory_space<vmem>>, vector<1x4x128xf32>,
    %c6_i32 = arith.constant 6 : i32
    %22 = arith.muli %arg0, %c6_i32 : i32
    %c0_i32_21 = arith.constant 0 : i32
    %23 = arith.addi %22, %c0_i32_21 : i32
    %c5_i32 = arith.constant 5 : i32
    %24 = arith.cmpi slt, %23, %c5_i32 : i32
    %25 = arith.extui %24 : i1 to i32
    %c0_i32_22 = arith.constant 0 : i32
    %26 = arith.cmpi ne, %25, %c0_i32_22 : i32
    scf.if %26 {
      %cst_74 = arith.constant dense<0.000000e+00> : vector<24x128xf32>
      %112 = tpu.matmul %3, %10, %cst_74 {dimension_numbers = #tpu.dot_dimension_numbers<[1], [0], [0], [1], [0, 0, 1, 1], [], []>} : vector<24x8xf32>, vector<8x128xf32>, vector<24x128xf32> -> vector<24x128xf32>
      %cst_75 = arith.constant dense<0.000000e+00> : vector<24xf32>
      %113 = vector.multi_reduction <add>, %112, %cst_75 [1] : vector<24x128xf32> to vector<24xf32>
      %114 = vector.shape_cast %113 : vector<24xf32> to vector<24x1xf32>
      %cst_76 = arith.constant 7.812500e-03 : f32
      %115 = vector.broadcast %cst_76 : f32 to vector<24x1xf32>
      %116 = arith.mulf %114, %115 : vector<24x1xf32>
      %117 = arith.mulf %112, %112 : vector<24x128xf32>
      %cst_77 = arith.constant dense<0.000000e+00> : vector<24xf32>
      %118 = vector.multi_reduction <add>, %117, %cst_77 [1] : vector<24x128xf32> to vector<24xf32>
      %119 = vector.shape_cast %118 : vector<24xf32> to vector<24x1xf32>
      %cst_78 = arith.constant 7.812500e-03 : f32
      %120 = vector.broadcast %cst_78 : f32 to vector<24x1xf32>
      %121 = arith.mulf %119, %120 : vector<24x1xf32>
      %122 = arith.mulf %116, %116 : vector<24x1xf32>
      %123 = arith.subf %121, %122 : vector<24x1xf32>
      %cst_79 = arith.constant 9.99999974E-6 : f32
      %124 = vector.broadcast %cst_79 : f32 to vector<24x1xf32>
      %125 = arith.addf %123, %124 : vector<24x1xf32>
      %126 = math.rsqrt %125 : vector<24x1xf32>
      %127 = arith.mulf %4, %126 : vector<24x1xf32>
      %128 = arith.mulf %116, %127 : vector<24x1xf32>
      %129 = arith.subf %5, %128 : vector<24x1xf32>
      %130 = vector.broadcast %127 : vector<24x1xf32> to vector<24x128xf32>
      %131 = arith.mulf %112, %130 : vector<24x128xf32>
      %132 = vector.broadcast %129 : vector<24x1xf32> to vector<24x128xf32>
      %133 = arith.addf %131, %132 : vector<24x128xf32>
      %134 = math.tanh %133 : vector<24x128xf32>
      %c0_80 = arith.constant 0 : index
      %c0_81 = arith.constant 0 : index
      %c0_82 = arith.constant 0 : index
      %135 = vector.load %arg1[%c0_80, %c0_81, %c0_82] : memref<6x2x128xf32, #tpu.memory_space<vmem>>, vector<1x2x128xf32>
      %136 = vector.shape_cast %135 : vector<1x2x128xf32> to vector<2x128xf32>
      %137 = vector.extract_strided_slice %134 {offsets = [0, 0], sizes = [8, 128], strides = [1, 1]} : vector<24x128xf32> to vector<8x128xf32>
      %138 = vector.extract_strided_slice %134 {offsets = [8, 0], sizes = [8, 128], strides = [1, 1]} : vector<24x128xf32> to vector<8x128xf32>
      %139 = vector.extract_strided_slice %136 {offsets = [0, 0], sizes = [1, 128], strides = [1, 1]} : vector<2x128xf32> to vector<1x128xf32>
      %140 = vector.broadcast %139 : vector<1x128xf32> to vector<8x128xf32>
      %141 = arith.mulf %138, %140 : vector<8x128xf32>
      %142 = arith.addf %137, %141 : vector<8x128xf32>
      %143 = vector.extract_strided_slice %134 {offsets = [16, 0], sizes = [8, 128], strides = [1, 1]} : vector<24x128xf32> to vector<8x128xf32>
      %144 = vector.extract_strided_slice %136 {offsets = [1, 0], sizes = [1, 128], strides = [1, 1]} : vector<2x128xf32> to vector<1x128xf32>
      %145 = vector.broadcast %144 : vector<1x128xf32> to vector<8x128xf32>
      %146 = arith.mulf %143, %145 : vector<8x128xf32>
      %147 = arith.addf %142, %146 : vector<8x128xf32>
      %cst_83 = arith.constant 2.000000e-01 : f32
      %148 = vector.broadcast %cst_83 : f32 to vector<8x128xf32>
      %149 = arith.mulf %148, %147 : vector<8x128xf32>
      %150 = arith.addf %10, %149 : vector<8x128xf32>
      %c0_84 = arith.constant 0 : index
      %c0_85 = arith.constant 0 : index
      %151 = vector.load %arg13[%c0_84, %c0_85] : memref<8x128xf32, #tpu.memory_space<vmem>>, vector<8x128xf32>
      tpu.vector_store %arg13[%c0_84, %c0_85], %150 {strides = array<i32>} : memref<8x128xf32, #tpu.memory_space<vmem>>, vector<8x128xf32>,
    } else {
    }
    %c0_23 = arith.constant 0 : index
    %c0_24 = arith.constant 0 : index
    %27 = vector.load %arg13[%c0_23, %c0_24] : memref<8x128xf32, #tpu.memory_space<vmem>>, vector<8x128xf32>
    %cst_25 = arith.constant dense<0.000000e+00> : vector<128x128xf32>
    %28 = tpu.matmul %6, %27, %cst_25 {dimension_numbers = #tpu.dot_dimension_numbers<[1], [0], [0], [1], [0, 0, 1, 1], [], []>} : vector<128x8xf32>, vector<8x128xf32>, vector<128x128xf32> -> vector<128x128xf32>
    %29 = vector.broadcast %7 : vector<128x1xf32> to vector<128x128xf32>
    %30 = arith.addf %28, %29 : vector<128x128xf32>
    %cst_26 = arith.constant 0.000000e+00 : f32
    %31 = vector.broadcast %cst_26 : f32 to vector<128x128xf32>
    %32 = arith.maximumf %30, %31 : vector<128x128xf32>
    %cst_27 = arith.constant dense<0.000000e+00> : vector<4x128xf32>
    %33 = tpu.matmul %8, %32, %cst_27 {dimension_numbers = #tpu.dot_dimension_numbers<[1], [0], [0], [1], [0, 0, 1, 1], [], []>} : vector<4x128xf32>, vector<128x128xf32>, vector<4x128xf32> -> vector<4x128xf32>
    %34 = vector.broadcast %9 : vector<4x1xf32> to vector<4x128xf32>
    %35 = arith.addf %33, %34 : vector<4x128xf32>
    %c1 = arith.constant 1 : index
    %c0_28 = arith.constant 0 : index
    %c0_29 = arith.constant 0 : index
    %36 = vector.load %arg12[%c1, %c0_28, %c0_29] : memref<6x4x128xf32, #tpu.memory_space<vmem>>, vector<1x4x128xf32>
    %37 = vector.shape_cast %36 : vector<1x4x128xf32> to vector<4x128xf32>
    %38 = vector.shape_cast %35 : vector<4x128xf32> to vector<1x4x128xf32>
    tpu.vector_store %arg12[%c1, %c0_28, %c0_29], %38 {strides = array<i32>} : memref<6x4x128xf32, #tpu.memory_space<vmem>>, vector<1x4x128xf32>,
    %c6_i32_30 = arith.constant 6 : i32
    %39 = arith.muli %arg0, %c6_i32_30 : i32
    %c1_i32 = arith.constant 1 : i32
    %40 = arith.addi %39, %c1_i32 : i32
    %c5_i32_31 = arith.constant 5 : i32
    %41 = arith.cmpi slt, %40, %c5_i32_31 : i32
    %42 = arith.extui %41 : i1 to i32
    %c0_i32_32 = arith.constant 0 : i32
    %43 = arith.cmpi ne, %42, %c0_i32_32 : i32
    scf.if %43 {
      %cst_74 = arith.constant dense<0.000000e+00> : vector<24x128xf32>
      %112 = tpu.matmul %3, %27, %cst_74 {dimension_numbers = #tpu.dot_dimension_numbers<[1], [0], [0], [1], [0, 0, 1, 1], [], []>} : vector<24x8xf32>, vector<8x128xf32>, vector<24x128xf32> -> vector<24x128xf32>
      %cst_75 = arith.constant dense<0.000000e+00> : vector<24xf32>
      %113 = vector.multi_reduction <add>, %112, %cst_75 [1] : vector<24x128xf32> to vector<24xf32>
      %114 = vector.shape_cast %113 : vector<24xf32> to vector<24x1xf32>
      %cst_76 = arith.constant 7.812500e-03 : f32
      %115 = vector.broadcast %cst_76 : f32 to vector<24x1xf32>
      %116 = arith.mulf %114, %115 : vector<24x1xf32>
      %117 = arith.mulf %112, %112 : vector<24x128xf32>
      %cst_77 = arith.constant dense<0.000000e+00> : vector<24xf32>
      %118 = vector.multi_reduction <add>, %117, %cst_77 [1] : vector<24x128xf32> to vector<24xf32>
      %119 = vector.shape_cast %118 : vector<24xf32> to vector<24x1xf32>
      %cst_78 = arith.constant 7.812500e-03 : f32
      %120 = vector.broadcast %cst_78 : f32 to vector<24x1xf32>
      %121 = arith.mulf %119, %120 : vector<24x1xf32>
      %122 = arith.mulf %116, %116 : vector<24x1xf32>
      %123 = arith.subf %121, %122 : vector<24x1xf32>
      %cst_79 = arith.constant 9.99999974E-6 : f32
      %124 = vector.broadcast %cst_79 : f32 to vector<24x1xf32>
      %125 = arith.addf %123, %124 : vector<24x1xf32>
      %126 = math.rsqrt %125 : vector<24x1xf32>
      %127 = arith.mulf %4, %126 : vector<24x1xf32>
      %128 = arith.mulf %116, %127 : vector<24x1xf32>
      %129 = arith.subf %5, %128 : vector<24x1xf32>
      %130 = vector.broadcast %127 : vector<24x1xf32> to vector<24x128xf32>
      %131 = arith.mulf %112, %130 : vector<24x128xf32>
      %132 = vector.broadcast %129 : vector<24x1xf32> to vector<24x128xf32>
      %133 = arith.addf %131, %132 : vector<24x128xf32>
      %134 = math.tanh %133 : vector<24x128xf32>
      %c1_80 = arith.constant 1 : index
      %c0_81 = arith.constant 0 : index
      %c0_82 = arith.constant 0 : index
      %135 = vector.load %arg1[%c1_80, %c0_81, %c0_82] : memref<6x2x128xf32, #tpu.memory_space<vmem>>, vector<1x2x128xf32>
      %136 = vector.shape_cast %135 : vector<1x2x128xf32> to vector<2x128xf32>
      %137 = vector.extract_strided_slice %134 {offsets = [0, 0], sizes = [8, 128], strides = [1, 1]} : vector<24x128xf32> to vector<8x128xf32>
      %138 = vector.extract_strided_slice %134 {offsets = [8, 0], sizes = [8, 128], strides = [1, 1]} : vector<24x128xf32> to vector<8x128xf32>
      %139 = vector.extract_strided_slice %136 {offsets = [0, 0], sizes = [1, 128], strides = [1, 1]} : vector<2x128xf32> to vector<1x128xf32>
      %140 = vector.broadcast %139 : vector<1x128xf32> to vector<8x128xf32>
      %141 = arith.mulf %138, %140 : vector<8x128xf32>
      %142 = arith.addf %137, %141 : vector<8x128xf32>
      %143 = vector.extract_strided_slice %134 {offsets = [16, 0], sizes = [8, 128], strides = [1, 1]} : vector<24x128xf32> to vector<8x128xf32>
      %144 = vector.extract_strided_slice %136 {offsets = [1, 0], sizes = [1, 128], strides = [1, 1]} : vector<2x128xf32> to vector<1x128xf32>
      %145 = vector.broadcast %144 : vector<1x128xf32> to vector<8x128xf32>
      %146 = arith.mulf %143, %145 : vector<8x128xf32>
      %147 = arith.addf %142, %146 : vector<8x128xf32>
      %cst_83 = arith.constant 2.000000e-01 : f32
      %148 = vector.broadcast %cst_83 : f32 to vector<8x128xf32>
      %149 = arith.mulf %148, %147 : vector<8x128xf32>
      %150 = arith.addf %27, %149 : vector<8x128xf32>
      %c0_84 = arith.constant 0 : index
      %c0_85 = arith.constant 0 : index
      %151 = vector.load %arg13[%c0_84, %c0_85] : memref<8x128xf32, #tpu.memory_space<vmem>>, vector<8x128xf32>
      tpu.vector_store %arg13[%c0_84, %c0_85], %150 {strides = array<i32>} : memref<8x128xf32, #tpu.memory_space<vmem>>, vector<8x128xf32>,
    } else {
    }
    %c0_33 = arith.constant 0 : index
    %c0_34 = arith.constant 0 : index
    %44 = vector.load %arg13[%c0_33, %c0_34] : memref<8x128xf32, #tpu.memory_space<vmem>>, vector<8x128xf32>
    %cst_35 = arith.constant dense<0.000000e+00> : vector<128x128xf32>
    %45 = tpu.matmul %6, %44, %cst_35 {dimension_numbers = #tpu.dot_dimension_numbers<[1], [0], [0], [1], [0, 0, 1, 1], [], []>} : vector<128x8xf32>, vector<8x128xf32>, vector<128x128xf32> -> vector<128x128xf32>
    %46 = vector.broadcast %7 : vector<128x1xf32> to vector<128x128xf32>
    %47 = arith.addf %45, %46 : vector<128x128xf32>
    %cst_36 = arith.constant 0.000000e+00 : f32
    %48 = vector.broadcast %cst_36 : f32 to vector<128x128xf32>
    %49 = arith.maximumf %47, %48 : vector<128x128xf32>
    %cst_37 = arith.constant dense<0.000000e+00> : vector<4x128xf32>
    %50 = tpu.matmul %8, %49, %cst_37 {dimension_numbers = #tpu.dot_dimension_numbers<[1], [0], [0], [1], [0, 0, 1, 1], [], []>} : vector<4x128xf32>, vector<128x128xf32>, vector<4x128xf32> -> vector<4x128xf32>
    %51 = vector.broadcast %9 : vector<4x1xf32> to vector<4x128xf32>
    %52 = arith.addf %50, %51 : vector<4x128xf32>
    %c2 = arith.constant 2 : index
    %c0_38 = arith.constant 0 : index
    %c0_39 = arith.constant 0 : index
    %53 = vector.load %arg12[%c2, %c0_38, %c0_39] : memref<6x4x128xf32, #tpu.memory_space<vmem>>, vector<1x4x128xf32>
    %54 = vector.shape_cast %53 : vector<1x4x128xf32> to vector<4x128xf32>
    %55 = vector.shape_cast %52 : vector<4x128xf32> to vector<1x4x128xf32>
    tpu.vector_store %arg12[%c2, %c0_38, %c0_39], %55 {strides = array<i32>} : memref<6x4x128xf32, #tpu.memory_space<vmem>>, vector<1x4x128xf32>,
    %c6_i32_40 = arith.constant 6 : i32
    %56 = arith.muli %arg0, %c6_i32_40 : i32
    %c2_i32 = arith.constant 2 : i32
    %57 = arith.addi %56, %c2_i32 : i32
    %c5_i32_41 = arith.constant 5 : i32
    %58 = arith.cmpi slt, %57, %c5_i32_41 : i32
    %59 = arith.extui %58 : i1 to i32
    %c0_i32_42 = arith.constant 0 : i32
    %60 = arith.cmpi ne, %59, %c0_i32_42 : i32
    scf.if %60 {
      %cst_74 = arith.constant dense<0.000000e+00> : vector<24x128xf32>
      %112 = tpu.matmul %3, %44, %cst_74 {dimension_numbers = #tpu.dot_dimension_numbers<[1], [0], [0], [1], [0, 0, 1, 1], [], []>} : vector<24x8xf32>, vector<8x128xf32>, vector<24x128xf32> -> vector<24x128xf32>
      %cst_75 = arith.constant dense<0.000000e+00> : vector<24xf32>
      %113 = vector.multi_reduction <add>, %112, %cst_75 [1] : vector<24x128xf32> to vector<24xf32>
      %114 = vector.shape_cast %113 : vector<24xf32> to vector<24x1xf32>
      %cst_76 = arith.constant 7.812500e-03 : f32
      %115 = vector.broadcast %cst_76 : f32 to vector<24x1xf32>
      %116 = arith.mulf %114, %115 : vector<24x1xf32>
      %117 = arith.mulf %112, %112 : vector<24x128xf32>
      %cst_77 = arith.constant dense<0.000000e+00> : vector<24xf32>
      %118 = vector.multi_reduction <add>, %117, %cst_77 [1] : vector<24x128xf32> to vector<24xf32>
      %119 = vector.shape_cast %118 : vector<24xf32> to vector<24x1xf32>
      %cst_78 = arith.constant 7.812500e-03 : f32
      %120 = vector.broadcast %cst_78 : f32 to vector<24x1xf32>
      %121 = arith.mulf %119, %120 : vector<24x1xf32>
      %122 = arith.mulf %116, %116 : vector<24x1xf32>
      %123 = arith.subf %121, %122 : vector<24x1xf32>
      %cst_79 = arith.constant 9.99999974E-6 : f32
      %124 = vector.broadcast %cst_79 : f32 to vector<24x1xf32>
      %125 = arith.addf %123, %124 : vector<24x1xf32>
      %126 = math.rsqrt %125 : vector<24x1xf32>
      %127 = arith.mulf %4, %126 : vector<24x1xf32>
      %128 = arith.mulf %116, %127 : vector<24x1xf32>
      %129 = arith.subf %5, %128 : vector<24x1xf32>
      %130 = vector.broadcast %127 : vector<24x1xf32> to vector<24x128xf32>
      %131 = arith.mulf %112, %130 : vector<24x128xf32>
      %132 = vector.broadcast %129 : vector<24x1xf32> to vector<24x128xf32>
      %133 = arith.addf %131, %132 : vector<24x128xf32>
      %134 = math.tanh %133 : vector<24x128xf32>
      %c2_80 = arith.constant 2 : index
      %c0_81 = arith.constant 0 : index
      %c0_82 = arith.constant 0 : index
      %135 = vector.load %arg1[%c2_80, %c0_81, %c0_82] : memref<6x2x128xf32, #tpu.memory_space<vmem>>, vector<1x2x128xf32>
      %136 = vector.shape_cast %135 : vector<1x2x128xf32> to vector<2x128xf32>
      %137 = vector.extract_strided_slice %134 {offsets = [0, 0], sizes = [8, 128], strides = [1, 1]} : vector<24x128xf32> to vector<8x128xf32>
      %138 = vector.extract_strided_slice %134 {offsets = [8, 0], sizes = [8, 128], strides = [1, 1]} : vector<24x128xf32> to vector<8x128xf32>
      %139 = vector.extract_strided_slice %136 {offsets = [0, 0], sizes = [1, 128], strides = [1, 1]} : vector<2x128xf32> to vector<1x128xf32>
      %140 = vector.broadcast %139 : vector<1x128xf32> to vector<8x128xf32>
      %141 = arith.mulf %138, %140 : vector<8x128xf32>
      %142 = arith.addf %137, %141 : vector<8x128xf32>
      %143 = vector.extract_strided_slice %134 {offsets = [16, 0], sizes = [8, 128], strides = [1, 1]} : vector<24x128xf32> to vector<8x128xf32>
      %144 = vector.extract_strided_slice %136 {offsets = [1, 0], sizes = [1, 128], strides = [1, 1]} : vector<2x128xf32> to vector<1x128xf32>
      %145 = vector.broadcast %144 : vector<1x128xf32> to vector<8x128xf32>
      %146 = arith.mulf %143, %145 : vector<8x128xf32>
      %147 = arith.addf %142, %146 : vector<8x128xf32>
      %cst_83 = arith.constant 2.000000e-01 : f32
      %148 = vector.broadcast %cst_83 : f32 to vector<8x128xf32>
      %149 = arith.mulf %148, %147 : vector<8x128xf32>
      %150 = arith.addf %44, %149 : vector<8x128xf32>
      %c0_84 = arith.constant 0 : index
      %c0_85 = arith.constant 0 : index
      %151 = vector.load %arg13[%c0_84, %c0_85] : memref<8x128xf32, #tpu.memory_space<vmem>>, vector<8x128xf32>
      tpu.vector_store %arg13[%c0_84, %c0_85], %150 {strides = array<i32>} : memref<8x128xf32, #tpu.memory_space<vmem>>, vector<8x128xf32>,
    } else {
    }
    %c0_43 = arith.constant 0 : index
    %c0_44 = arith.constant 0 : index
    %61 = vector.load %arg13[%c0_43, %c0_44] : memref<8x128xf32, #tpu.memory_space<vmem>>, vector<8x128xf32>
    %cst_45 = arith.constant dense<0.000000e+00> : vector<128x128xf32>
    %62 = tpu.matmul %6, %61, %cst_45 {dimension_numbers = #tpu.dot_dimension_numbers<[1], [0], [0], [1], [0, 0, 1, 1], [], []>} : vector<128x8xf32>, vector<8x128xf32>, vector<128x128xf32> -> vector<128x128xf32>
    %63 = vector.broadcast %7 : vector<128x1xf32> to vector<128x128xf32>
    %64 = arith.addf %62, %63 : vector<128x128xf32>
    %cst_46 = arith.constant 0.000000e+00 : f32
    %65 = vector.broadcast %cst_46 : f32 to vector<128x128xf32>
    %66 = arith.maximumf %64, %65 : vector<128x128xf32>
    %cst_47 = arith.constant dense<0.000000e+00> : vector<4x128xf32>
    %67 = tpu.matmul %8, %66, %cst_47 {dimension_numbers = #tpu.dot_dimension_numbers<[1], [0], [0], [1], [0, 0, 1, 1], [], []>} : vector<4x128xf32>, vector<128x128xf32>, vector<4x128xf32> -> vector<4x128xf32>
    %68 = vector.broadcast %9 : vector<4x1xf32> to vector<4x128xf32>
    %69 = arith.addf %67, %68 : vector<4x128xf32>
    %c3 = arith.constant 3 : index
    %c0_48 = arith.constant 0 : index
    %c0_49 = arith.constant 0 : index
    %70 = vector.load %arg12[%c3, %c0_48, %c0_49] : memref<6x4x128xf32, #tpu.memory_space<vmem>>, vector<1x4x128xf32>
    %71 = vector.shape_cast %70 : vector<1x4x128xf32> to vector<4x128xf32>
    %72 = vector.shape_cast %69 : vector<4x128xf32> to vector<1x4x128xf32>
    tpu.vector_store %arg12[%c3, %c0_48, %c0_49], %72 {strides = array<i32>} : memref<6x4x128xf32, #tpu.memory_space<vmem>>, vector<1x4x128xf32>,
    %c6_i32_50 = arith.constant 6 : i32
    %73 = arith.muli %arg0, %c6_i32_50 : i32
    %c3_i32 = arith.constant 3 : i32
    %74 = arith.addi %73, %c3_i32 : i32
    %c5_i32_51 = arith.constant 5 : i32
    %75 = arith.cmpi slt, %74, %c5_i32_51 : i32
    %76 = arith.extui %75 : i1 to i32
    %c0_i32_52 = arith.constant 0 : i32
    %77 = arith.cmpi ne, %76, %c0_i32_52 : i32
    scf.if %77 {
      %cst_74 = arith.constant dense<0.000000e+00> : vector<24x128xf32>
      %112 = tpu.matmul %3, %61, %cst_74 {dimension_numbers = #tpu.dot_dimension_numbers<[1], [0], [0], [1], [0, 0, 1, 1], [], []>} : vector<24x8xf32>, vector<8x128xf32>, vector<24x128xf32> -> vector<24x128xf32>
      %cst_75 = arith.constant dense<0.000000e+00> : vector<24xf32>
      %113 = vector.multi_reduction <add>, %112, %cst_75 [1] : vector<24x128xf32> to vector<24xf32>
      %114 = vector.shape_cast %113 : vector<24xf32> to vector<24x1xf32>
      %cst_76 = arith.constant 7.812500e-03 : f32
      %115 = vector.broadcast %cst_76 : f32 to vector<24x1xf32>
      %116 = arith.mulf %114, %115 : vector<24x1xf32>
      %117 = arith.mulf %112, %112 : vector<24x128xf32>
      %cst_77 = arith.constant dense<0.000000e+00> : vector<24xf32>
      %118 = vector.multi_reduction <add>, %117, %cst_77 [1] : vector<24x128xf32> to vector<24xf32>
      %119 = vector.shape_cast %118 : vector<24xf32> to vector<24x1xf32>
      %cst_78 = arith.constant 7.812500e-03 : f32
      %120 = vector.broadcast %cst_78 : f32 to vector<24x1xf32>
      %121 = arith.mulf %119, %120 : vector<24x1xf32>
      %122 = arith.mulf %116, %116 : vector<24x1xf32>
      %123 = arith.subf %121, %122 : vector<24x1xf32>
      %cst_79 = arith.constant 9.99999974E-6 : f32
      %124 = vector.broadcast %cst_79 : f32 to vector<24x1xf32>
      %125 = arith.addf %123, %124 : vector<24x1xf32>
      %126 = math.rsqrt %125 : vector<24x1xf32>
      %127 = arith.mulf %4, %126 : vector<24x1xf32>
      %128 = arith.mulf %116, %127 : vector<24x1xf32>
      %129 = arith.subf %5, %128 : vector<24x1xf32>
      %130 = vector.broadcast %127 : vector<24x1xf32> to vector<24x128xf32>
      %131 = arith.mulf %112, %130 : vector<24x128xf32>
      %132 = vector.broadcast %129 : vector<24x1xf32> to vector<24x128xf32>
      %133 = arith.addf %131, %132 : vector<24x128xf32>
      %134 = math.tanh %133 : vector<24x128xf32>
      %c3_80 = arith.constant 3 : index
      %c0_81 = arith.constant 0 : index
      %c0_82 = arith.constant 0 : index
      %135 = vector.load %arg1[%c3_80, %c0_81, %c0_82] : memref<6x2x128xf32, #tpu.memory_space<vmem>>, vector<1x2x128xf32>
      %136 = vector.shape_cast %135 : vector<1x2x128xf32> to vector<2x128xf32>
      %137 = vector.extract_strided_slice %134 {offsets = [0, 0], sizes = [8, 128], strides = [1, 1]} : vector<24x128xf32> to vector<8x128xf32>
      %138 = vector.extract_strided_slice %134 {offsets = [8, 0], sizes = [8, 128], strides = [1, 1]} : vector<24x128xf32> to vector<8x128xf32>
      %139 = vector.extract_strided_slice %136 {offsets = [0, 0], sizes = [1, 128], strides = [1, 1]} : vector<2x128xf32> to vector<1x128xf32>
      %140 = vector.broadcast %139 : vector<1x128xf32> to vector<8x128xf32>
      %141 = arith.mulf %138, %140 : vector<8x128xf32>
      %142 = arith.addf %137, %141 : vector<8x128xf32>
      %143 = vector.extract_strided_slice %134 {offsets = [16, 0], sizes = [8, 128], strides = [1, 1]} : vector<24x128xf32> to vector<8x128xf32>
      %144 = vector.extract_strided_slice %136 {offsets = [1, 0], sizes = [1, 128], strides = [1, 1]} : vector<2x128xf32> to vector<1x128xf32>
      %145 = vector.broadcast %144 : vector<1x128xf32> to vector<8x128xf32>
      %146 = arith.mulf %143, %145 : vector<8x128xf32>
      %147 = arith.addf %142, %146 : vector<8x128xf32>
      %cst_83 = arith.constant 2.000000e-01 : f32
      %148 = vector.broadcast %cst_83 : f32 to vector<8x128xf32>
      %149 = arith.mulf %148, %147 : vector<8x128xf32>
      %150 = arith.addf %61, %149 : vector<8x128xf32>
      %c0_84 = arith.constant 0 : index
      %c0_85 = arith.constant 0 : index
      %151 = vector.load %arg13[%c0_84, %c0_85] : memref<8x128xf32, #tpu.memory_space<vmem>>, vector<8x128xf32>
      tpu.vector_store %arg13[%c0_84, %c0_85], %150 {strides = array<i32>} : memref<8x128xf32, #tpu.memory_space<vmem>>, vector<8x128xf32>,
    } else {
    }
    %c0_53 = arith.constant 0 : index
    %c0_54 = arith.constant 0 : index
    %78 = vector.load %arg13[%c0_53, %c0_54] : memref<8x128xf32, #tpu.memory_space<vmem>>, vector<8x128xf32>
    %cst_55 = arith.constant dense<0.000000e+00> : vector<128x128xf32>
    %79 = tpu.matmul %6, %78, %cst_55 {dimension_numbers = #tpu.dot_dimension_numbers<[1], [0], [0], [1], [0, 0, 1, 1], [], []>} : vector<128x8xf32>, vector<8x128xf32>, vector<128x128xf32> -> vector<128x128xf32>
    %80 = vector.broadcast %7 : vector<128x1xf32> to vector<128x128xf32>
    %81 = arith.addf %79, %80 : vector<128x128xf32>
    %cst_56 = arith.constant 0.000000e+00 : f32
    %82 = vector.broadcast %cst_56 : f32 to vector<128x128xf32>
    %83 = arith.maximumf %81, %82 : vector<128x128xf32>
    %cst_57 = arith.constant dense<0.000000e+00> : vector<4x128xf32>
    %84 = tpu.matmul %8, %83, %cst_57 {dimension_numbers = #tpu.dot_dimension_numbers<[1], [0], [0], [1], [0, 0, 1, 1], [], []>} : vector<4x128xf32>, vector<128x128xf32>, vector<4x128xf32> -> vector<4x128xf32>
    %85 = vector.broadcast %9 : vector<4x1xf32> to vector<4x128xf32>
    %86 = arith.addf %84, %85 : vector<4x128xf32>
    %c4 = arith.constant 4 : index
    %c0_58 = arith.constant 0 : index
    %c0_59 = arith.constant 0 : index
    %87 = vector.load %arg12[%c4, %c0_58, %c0_59] : memref<6x4x128xf32, #tpu.memory_space<vmem>>, vector<1x4x128xf32>
    %88 = vector.shape_cast %87 : vector<1x4x128xf32> to vector<4x128xf32>
    %89 = vector.shape_cast %86 : vector<4x128xf32> to vector<1x4x128xf32>
    tpu.vector_store %arg12[%c4, %c0_58, %c0_59], %89 {strides = array<i32>} : memref<6x4x128xf32, #tpu.memory_space<vmem>>, vector<1x4x128xf32>,
    %c6_i32_60 = arith.constant 6 : i32
    %90 = arith.muli %arg0, %c6_i32_60 : i32
    %c4_i32 = arith.constant 4 : i32
    %91 = arith.addi %90, %c4_i32 : i32
    %c5_i32_61 = arith.constant 5 : i32
    %92 = arith.cmpi slt, %91, %c5_i32_61 : i32
    %93 = arith.extui %92 : i1 to i32
    %c0_i32_62 = arith.constant 0 : i32
    %94 = arith.cmpi ne, %93, %c0_i32_62 : i32
    scf.if %94 {
      %cst_74 = arith.constant dense<0.000000e+00> : vector<24x128xf32>
      %112 = tpu.matmul %3, %78, %cst_74 {dimension_numbers = #tpu.dot_dimension_numbers<[1], [0], [0], [1], [0, 0, 1, 1], [], []>} : vector<24x8xf32>, vector<8x128xf32>, vector<24x128xf32> -> vector<24x128xf32>
      %cst_75 = arith.constant dense<0.000000e+00> : vector<24xf32>
      %113 = vector.multi_reduction <add>, %112, %cst_75 [1] : vector<24x128xf32> to vector<24xf32>
      %114 = vector.shape_cast %113 : vector<24xf32> to vector<24x1xf32>
      %cst_76 = arith.constant 7.812500e-03 : f32
      %115 = vector.broadcast %cst_76 : f32 to vector<24x1xf32>
      %116 = arith.mulf %114, %115 : vector<24x1xf32>
      %117 = arith.mulf %112, %112 : vector<24x128xf32>
      %cst_77 = arith.constant dense<0.000000e+00> : vector<24xf32>
      %118 = vector.multi_reduction <add>, %117, %cst_77 [1] : vector<24x128xf32> to vector<24xf32>
      %119 = vector.shape_cast %118 : vector<24xf32> to vector<24x1xf32>
      %cst_78 = arith.constant 7.812500e-03 : f32
      %120 = vector.broadcast %cst_78 : f32 to vector<24x1xf32>
      %121 = arith.mulf %119, %120 : vector<24x1xf32>
      %122 = arith.mulf %116, %116 : vector<24x1xf32>
      %123 = arith.subf %121, %122 : vector<24x1xf32>
      %cst_79 = arith.constant 9.99999974E-6 : f32
      %124 = vector.broadcast %cst_79 : f32 to vector<24x1xf32>
      %125 = arith.addf %123, %124 : vector<24x1xf32>
      %126 = math.rsqrt %125 : vector<24x1xf32>
      %127 = arith.mulf %4, %126 : vector<24x1xf32>
      %128 = arith.mulf %116, %127 : vector<24x1xf32>
      %129 = arith.subf %5, %128 : vector<24x1xf32>
      %130 = vector.broadcast %127 : vector<24x1xf32> to vector<24x128xf32>
      %131 = arith.mulf %112, %130 : vector<24x128xf32>
      %132 = vector.broadcast %129 : vector<24x1xf32> to vector<24x128xf32>
      %133 = arith.addf %131, %132 : vector<24x128xf32>
      %134 = math.tanh %133 : vector<24x128xf32>
      %c4_80 = arith.constant 4 : index
      %c0_81 = arith.constant 0 : index
      %c0_82 = arith.constant 0 : index
      %135 = vector.load %arg1[%c4_80, %c0_81, %c0_82] : memref<6x2x128xf32, #tpu.memory_space<vmem>>, vector<1x2x128xf32>
      %136 = vector.shape_cast %135 : vector<1x2x128xf32> to vector<2x128xf32>
      %137 = vector.extract_strided_slice %134 {offsets = [0, 0], sizes = [8, 128], strides = [1, 1]} : vector<24x128xf32> to vector<8x128xf32>
      %138 = vector.extract_strided_slice %134 {offsets = [8, 0], sizes = [8, 128], strides = [1, 1]} : vector<24x128xf32> to vector<8x128xf32>
      %139 = vector.extract_strided_slice %136 {offsets = [0, 0], sizes = [1, 128], strides = [1, 1]} : vector<2x128xf32> to vector<1x128xf32>
      %140 = vector.broadcast %139 : vector<1x128xf32> to vector<8x128xf32>
      %141 = arith.mulf %138, %140 : vector<8x128xf32>
      %142 = arith.addf %137, %141 : vector<8x128xf32>
      %143 = vector.extract_strided_slice %134 {offsets = [16, 0], sizes = [8, 128], strides = [1, 1]} : vector<24x128xf32> to vector<8x128xf32>
      %144 = vector.extract_strided_slice %136 {offsets = [1, 0], sizes = [1, 128], strides = [1, 1]} : vector<2x128xf32> to vector<1x128xf32>
      %145 = vector.broadcast %144 : vector<1x128xf32> to vector<8x128xf32>
      %146 = arith.mulf %143, %145 : vector<8x128xf32>
      %147 = arith.addf %142, %146 : vector<8x128xf32>
      %cst_83 = arith.constant 2.000000e-01 : f32
      %148 = vector.broadcast %cst_83 : f32 to vector<8x128xf32>
      %149 = arith.mulf %148, %147 : vector<8x128xf32>
      %150 = arith.addf %78, %149 : vector<8x128xf32>
      %c0_84 = arith.constant 0 : index
      %c0_85 = arith.constant 0 : index
      %151 = vector.load %arg13[%c0_84, %c0_85] : memref<8x128xf32, #tpu.memory_space<vmem>>, vector<8x128xf32>
      tpu.vector_store %arg13[%c0_84, %c0_85], %150 {strides = array<i32>} : memref<8x128xf32, #tpu.memory_space<vmem>>, vector<8x128xf32>,
    } else {
    }
    %c0_63 = arith.constant 0 : index
    %c0_64 = arith.constant 0 : index
    %95 = vector.load %arg13[%c0_63, %c0_64] : memref<8x128xf32, #tpu.memory_space<vmem>>, vector<8x128xf32>
    %cst_65 = arith.constant dense<0.000000e+00> : vector<128x128xf32>
    %96 = tpu.matmul %6, %95, %cst_65 {dimension_numbers = #tpu.dot_dimension_numbers<[1], [0], [0], [1], [0, 0, 1, 1], [], []>} : vector<128x8xf32>, vector<8x128xf32>, vector<128x128xf32> -> vector<128x128xf32>
    %97 = vector.broadcast %7 : vector<128x1xf32> to vector<128x128xf32>
    %98 = arith.addf %96, %97 : vector<128x128xf32>
    %cst_66 = arith.constant 0.000000e+00 : f32
    %99 = vector.broadcast %cst_66 : f32 to vector<128x128xf32>
    %100 = arith.maximumf %98, %99 : vector<128x128xf32>
    %cst_67 = arith.constant dense<0.000000e+00> : vector<4x128xf32>
    %101 = tpu.matmul %8, %100, %cst_67 {dimension_numbers = #tpu.dot_dimension_numbers<[1], [0], [0], [1], [0, 0, 1, 1], [], []>} : vector<4x128xf32>, vector<128x128xf32>, vector<4x128xf32> -> vector<4x128xf32>
    %102 = vector.broadcast %9 : vector<4x1xf32> to vector<4x128xf32>
    %103 = arith.addf %101, %102 : vector<4x128xf32>
    %c5 = arith.constant 5 : index
    %c0_68 = arith.constant 0 : index
    %c0_69 = arith.constant 0 : index
    %104 = vector.load %arg12[%c5, %c0_68, %c0_69] : memref<6x4x128xf32, #tpu.memory_space<vmem>>, vector<1x4x128xf32>
    %105 = vector.shape_cast %104 : vector<1x4x128xf32> to vector<4x128xf32>
    %106 = vector.shape_cast %103 : vector<4x128xf32> to vector<1x4x128xf32>
    tpu.vector_store %arg12[%c5, %c0_68, %c0_69], %106 {strides = array<i32>} : memref<6x4x128xf32, #tpu.memory_space<vmem>>, vector<1x4x128xf32>,
    %c6_i32_70 = arith.constant 6 : i32
    %107 = arith.muli %arg0, %c6_i32_70 : i32
    %c5_i32_71 = arith.constant 5 : i32
    %108 = arith.addi %107, %c5_i32_71 : i32
    %c5_i32_72 = arith.constant 5 : i32
    %109 = arith.cmpi slt, %108, %c5_i32_72 : i32
    %110 = arith.extui %109 : i1 to i32
    %c0_i32_73 = arith.constant 0 : i32
    %111 = arith.cmpi ne, %110, %c0_i32_73 : i32
    scf.if %111 {
      %cst_74 = arith.constant dense<0.000000e+00> : vector<24x128xf32>
      %112 = tpu.matmul %3, %95, %cst_74 {dimension_numbers = #tpu.dot_dimension_numbers<[1], [0], [0], [1], [0, 0, 1, 1], [], []>} : vector<24x8xf32>, vector<8x128xf32>, vector<24x128xf32> -> vector<24x128xf32>
      %cst_75 = arith.constant dense<0.000000e+00> : vector<24xf32>
      %113 = vector.multi_reduction <add>, %112, %cst_75 [1] : vector<24x128xf32> to vector<24xf32>
      %114 = vector.shape_cast %113 : vector<24xf32> to vector<24x1xf32>
      %cst_76 = arith.constant 7.812500e-03 : f32
      %115 = vector.broadcast %cst_76 : f32 to vector<24x1xf32>
      %116 = arith.mulf %114, %115 : vector<24x1xf32>
      %117 = arith.mulf %112, %112 : vector<24x128xf32>
      %cst_77 = arith.constant dense<0.000000e+00> : vector<24xf32>
      %118 = vector.multi_reduction <add>, %117, %cst_77 [1] : vector<24x128xf32> to vector<24xf32>
      %119 = vector.shape_cast %118 : vector<24xf32> to vector<24x1xf32>
      %cst_78 = arith.constant 7.812500e-03 : f32
      %120 = vector.broadcast %cst_78 : f32 to vector<24x1xf32>
      %121 = arith.mulf %119, %120 : vector<24x1xf32>
      %122 = arith.mulf %116, %116 : vector<24x1xf32>
      %123 = arith.subf %121, %122 : vector<24x1xf32>
      %cst_79 = arith.constant 9.99999974E-6 : f32
      %124 = vector.broadcast %cst_79 : f32 to vector<24x1xf32>
      %125 = arith.addf %123, %124 : vector<24x1xf32>
      %126 = math.rsqrt %125 : vector<24x1xf32>
      %127 = arith.mulf %4, %126 : vector<24x1xf32>
      %128 = arith.mulf %116, %127 : vector<24x1xf32>
      %129 = arith.subf %5, %128 : vector<24x1xf32>
      %130 = vector.broadcast %127 : vector<24x1xf32> to vector<24x128xf32>
      %131 = arith.mulf %112, %130 : vector<24x128xf32>
      %132 = vector.broadcast %129 : vector<24x1xf32> to vector<24x128xf32>
      %133 = arith.addf %131, %132 : vector<24x128xf32>
      %134 = math.tanh %133 : vector<24x128xf32>
      %c5_80 = arith.constant 5 : index
      %c0_81 = arith.constant 0 : index
      %c0_82 = arith.constant 0 : index
      %135 = vector.load %arg1[%c5_80, %c0_81, %c0_82] : memref<6x2x128xf32, #tpu.memory_space<vmem>>, vector<1x2x128xf32>
      %136 = vector.shape_cast %135 : vector<1x2x128xf32> to vector<2x128xf32>
      %137 = vector.extract_strided_slice %134 {offsets = [0, 0], sizes = [8, 128], strides = [1, 1]} : vector<24x128xf32> to vector<8x128xf32>
      %138 = vector.extract_strided_slice %134 {offsets = [8, 0], sizes = [8, 128], strides = [1, 1]} : vector<24x128xf32> to vector<8x128xf32>
      %139 = vector.extract_strided_slice %136 {offsets = [0, 0], sizes = [1, 128], strides = [1, 1]} : vector<2x128xf32> to vector<1x128xf32>
      %140 = vector.broadcast %139 : vector<1x128xf32> to vector<8x128xf32>
      %141 = arith.mulf %138, %140 : vector<8x128xf32>
      %142 = arith.addf %137, %141 : vector<8x128xf32>
      %143 = vector.extract_strided_slice %134 {offsets = [16, 0], sizes = [8, 128], strides = [1, 1]} : vector<24x128xf32> to vector<8x128xf32>
      %144 = vector.extract_strided_slice %136 {offsets = [1, 0], sizes = [1, 128], strides = [1, 1]} : vector<2x128xf32> to vector<1x128xf32>
      %145 = vector.broadcast %144 : vector<1x128xf32> to vector<8x128xf32>
      %146 = arith.mulf %143, %145 : vector<8x128xf32>
      %147 = arith.addf %142, %146 : vector<8x128xf32>
      %cst_83 = arith.constant 2.000000e-01 : f32
      %148 = vector.broadcast %cst_83 : f32 to vector<8x128xf32>
      %149 = arith.mulf %148, %147 : vector<8x128xf32>
      %150 = arith.addf %95, %149 : vector<8x128xf32>
      %c0_84 = arith.constant 0 : index
      %c0_85 = arith.constant 0 : index
      %151 = vector.load %arg13[%c0_84, %c0_85] : memref<8x128xf32, #tpu.memory_space<vmem>>, vector<8x128xf32>
      tpu.vector_store %arg13[%c0_84, %c0_85], %150 {strides = array<i32>} : memref<8x128xf32, #tpu.memory_space<vmem>>, vector<8x128xf32>,
    } else {
    }
    return
  }
  func.func @transform_0(%arg0: i32) -> (i32, i32, i32) {
    %c0_i32 = arith.constant 0 : i32
    %c0_i32_0 = arith.constant 0 : i32
    %c0_i32_1 = arith.constant 0 : i32
    return %arg0, %c0_i32, %c0_i32_0 : i32, i32, i32
  }
  func.func @transform_1(%arg0: i32) -> (i32, i32) {
    %c0_i32 = arith.constant 0 : i32
    %c0_i32_0 = arith.constant 0 : i32
    %c0_i32_1 = arith.constant 0 : i32
    return %c0_i32, %c0_i32_0 : i32, i32
  }
  func.func @transform_2(%arg0: i32) -> (i32, i32) {
    %c0_i32 = arith.constant 0 : i32
    %c0_i32_0 = arith.constant 0 : i32
    %c0_i32_1 = arith.constant 0 : i32
    return %c0_i32, %c0_i32_0 : i32, i32
  }
  func.func @transform_3(%arg0: i32) -> (i32, i32) {
    %c0_i32 = arith.constant 0 : i32
    %c0_i32_0 = arith.constant 0 : i32
    %c0_i32_1 = arith.constant 0 : i32
    return %c0_i32, %c0_i32_0 : i32, i32
  }
  func.func @transform_4(%arg0: i32) -> (i32, i32) {
    %c0_i32 = arith.constant 0 : i32
    %c0_i32_0 = arith.constant 0 : i32
    %c0_i32_1 = arith.constant 0 : i32
    return %c0_i32, %c0_i32_0 : i32, i32
  }
  func.func @transform_5(%arg0: i32) -> (i32, i32) {
    %c0_i32 = arith.constant 0 : i32
    %c0_i32_0 = arith.constant 0 : i32
    %c0_i32_1 = arith.constant 0 : i32
    return %c0_i32, %c0_i32_0 : i32, i32
  }
  func.func @transform_6(%arg0: i32) -> (i32, i32) {
    %c0_i32 = arith.constant 0 : i32
    %c0_i32_0 = arith.constant 0 : i32
    %c0_i32_1 = arith.constant 0 : i32
    return %c0_i32, %c0_i32_0 : i32, i32
  }
  func.func @transform_7(%arg0: i32) -> (i32, i32) {
    %c0_i32 = arith.constant 0 : i32
    %c0_i32_0 = arith.constant 0 : i32
    %c0_i32_1 = arith.constant 0 : i32
    return %c0_i32, %c0_i32_0 : i32, i32
  }
  func.func @transform_8(%arg0: i32) -> (i32, i32) {
    %c0_i32 = arith.constant 0 : i32
    %c0_i32_0 = arith.constant 0 : i32
    %c0_i32_1 = arith.constant 0 : i32
    return %c0_i32, %c0_i32_0 : i32, i32
  }
  func.func @transform_9(%arg0: i32) -> (i32, i32) {
    %c0_i32 = arith.constant 0 : i32
    %c0_i32_0 = arith.constant 0 : i32
    %c0_i32_1 = arith.constant 0 : i32
    return %c0_i32, %c0_i32_0 : i32, i32
  }
  func.func @transform_10(%arg0: i32) -> (i32, i32) {
    %c0_i32 = arith.constant 0 : i32
    %c0_i32_0 = arith.constant 0 : i32
    %c0_i32_1 = arith.constant 0 : i32
    return %c0_i32, %c0_i32_0 : i32, i32
  }
  func.func @transform_11(%arg0: i32) -> (i32, i32, i32) {
    %c0_i32 = arith.constant 0 : i32
    %c0_i32_0 = arith.constant 0 : i32
    %c0_i32_1 = arith.constant 0 : i32
    return %arg0, %c0_i32, %c0_i32_0 : i32, i32, i32
  }
}

</mosaic_0001>

<bundles_post_ra>
// kernel: tpu_custom_call.1
= control target key start
LH: loop header
LB: loop body
LE: loop exit
PB: predicated region body
PF: predicated region fallthrough
CT: control target
= control target key end

     0   :  { %vm55_vm0 = vcmask 1043456   ;;  %v4964_v2 = vmov 0.0   ;;  %vm3767_vm1 = vmmov 0   ;;  %vm51_vm2 = vcmask 31744   ;;  %s4952_s0 = inlined_call_operand.vmem [shape: f32[6,2,128], index: 0, kind: input, shape index: {}]   ;;  %s4953_s1 = inlined_call_operand.vmem [shape: f32[4,128], index: 1, kind: input, shape index: {}]   ;;  %s4954_s2 = inlined_call_operand.vmem [shape: f32[8,4], index: 2, kind: input, shape index: {}]   ;;  %s4955_s3 = inlined_call_operand.vmem [shape: f32[8,1], index: 3, kind: input, shape index: {}]   ;;  %s4956_s4 = inlined_call_operand.vmem [shape: f32[24,8], index: 4, kind: input, shape index: {}]   ;;  %s4957_s5 = inlined_call_operand.vmem [shape: f32[24,1], index: 5, kind: input, shape index: {}]   ;;  %s4958_s6 = inlined_call_operand.vmem [shape: f32[24,1], index: 6, kind: input, shape index: {}]   ;;  %s4959_s7 = inlined_call_operand.vmem [shape: f32[128,8], index: 7, kind: input, shape index: {}]   ;;  %s4960_s8 = inlined_call_operand.vmem [shape: f32[128,1], index: 8, kind: input, shape index: {}]   ;;  %s4961_s9 = inlined_call_operand.vmem [shape: f32[4,128], index: 9, kind: input, shape index: {}]   ;;  %s4962_s10 = inlined_call_operand.vmem [shape: f32[4,1], index: 10, kind: input, shape index: {}]   ;;  %s4963_s11 = inlined_call_operand.hbm [shape: f32[6,4,128], index: 11, kind: output, shape index: {}]  }
   0x1   :  { %v44_v0 = vld [vmem:[%s4953_s1] sm:$0xf]  ;;  %3224 = vmatprep.subr.mxu0 %v4964_v2  ;;  %3226 = vmatprep.mubr.msk.f32.mxu0 %vm3767_vm1, %v4964_v2 }
   0x2   :  { %v43_v1 = vld [vmem:[%s4954_s2] sm:$0xff] }
   0x3   :  { %v45_v3 = vld [vmem:[%s4955_s3] sm:$0xff] }
   0x4   :  { %16 = vsyncpa [#allocation4], 0  ;;  %3225 = vmatpush3.msk.msra.mxu0 %vm55_vm0, %v44_v0  ;;  %v3768_v4 = vmov 0   ;;  %v3850_v5 = vld [vmem:[%s4959_s7] sm:$0xff]  ;;  %vm254_vm3 = vcmask 64512   ;;  %v3859_v10 = vld [vmem:[%s4959_s7 + $0x8] sm:$0xff] }
   0x5   :  { %3656 = vset.pattern.permute.xlu0 %v3768_v4  ;;  %3227 = vmatmul.mubr.msk.f32.vlgmr.msra.gmra.mxu0 %vm51_vm2, %v43_v1  ;;  %v3865_v11 = vld [vmem:[%s4959_s7 + $0x10] sm:$0xff]  ;;  %v3877_v12 = vld [vmem:[%s4959_s7 + $0x18] sm:$0xff]  ;;  %v3882_v13 = vld [vmem:[%s4959_s7 + $0x20] sm:$0xff] }
   0x6   :  { %48 = vperm.xlu0 %3656, %v45_v3   ;;  %3657 = vset.pattern.permute.xlu1 %v3768_v4  ;;  %v3892_v14 = vld [vmem:[%s4959_s7 + $0x28] sm:$0xff]  ;;  %v3897_v15 = vld [vmem:[%s4959_s7 + $0x30] sm:$0xff]  ;;  %v3906_v16 = vld [vmem:[%s4959_s7 + $0x38] sm:$0xff] }
   0x7   :  { %3255 = vmatprep.subr.mxu0 %v4964_v2  ;;  %3287 = vmatprep.mubr.msk.f32.mxu0 %vm3767_vm1, %v4964_v2  ;;  %v3911_v17 = vld [vmem:[%s4959_s7 + $0x40] sm:$0xff]  ;;  %v3920_v18 = vld [vmem:[%s4959_s7 + $0x48] sm:$0xff]  ;;  %v3925_v19 = vld [vmem:[%s4959_s7 + $0x50] sm:$0xff] }
   0x8   :  { %3231 = vmatprep.mubr.msk.f32.mxu1 %vm254_vm3, %v3850_v5  ;;  %v3934_v20 = vld [vmem:[%s4959_s7 + $0x58] sm:$0xff]  ;;  %v3939_v21 = vld [vmem:[%s4959_s7 + $0x60] sm:$0xff]  ;;  %v3948_v22 = vld [vmem:[%s4959_s7 + $0x68] sm:$0xff] }
   0x9   :  { %4978 = vst [vmem:[#allocation6_spill] sm:$0xff] %v3939_v21  ;;  %4979 = vst [vmem:[#allocation7_spill] sm:$0xff] %v3948_v22  ;;  %v3953_v23 = vld [vmem:[%s4959_s7 + $0x70] sm:$0xff]  ;;  %v3962_v24 = vld [vmem:[%s4959_s7 + $0x78] sm:$0xff] }
   0xa   :  { %4980 = vst [vmem:[#allocation8_spill] sm:$0xff] %v3953_v23  ;;  %4981 = vst [vmem:[#allocation9_spill] sm:$0xff] %v3962_v24  ;;  %v3971_v25 = vld [vmem:[%s4956_s4] sm:$0xff]  ;;  %v3980_v26 = vld [vmem:[%s4956_s4 + $0x8] sm:$0xff] }
   0xb   :  { %4982 = vst [vmem:[#allocation10_spill] sm:$0xff] %v3971_v25  ;;  %4983 = vst [vmem:[#allocation11_spill] sm:$0xff] %v3980_v26  ;;  %v3989_v27 = vld [vmem:[%s4956_s4 + $0x10] sm:$0xff]  ;;  %v170_v54 = vld [vmem:[%s4960_s8 + $0x78] sm:$0xff] }
   0xc   :  { %4984 = vst [vmem:[#allocation12_spill] sm:$0xff] %v3989_v27  ;;  %v169_v53 = vld [vmem:[%s4960_s8 + $0x70] sm:$0xff]  ;;  %v168_v55 = vld [vmem:[%s4960_s8 + $0x68] sm:$0xff]  ;;  %v167_v56 = vld [vmem:[%s4960_s8 + $0x60] sm:$0xff] }
   0xd   :  { %v166_v57 = vld [vmem:[%s4960_s8 + $0x58] sm:$0xff]  ;;  %v165_v58 = vld [vmem:[%s4960_s8 + $0x50] sm:$0xff]  ;;  %v164_v59 = vld [vmem:[%s4960_s8 + $0x48] sm:$0xff] }
  0x81   :  { %v49_v6 = vpop.permute.xlu0 %48 }
  0xc5   :  { %v125_v7 = vpop.f32.mrf.mxu0 }
  0xc6   :  { %v3854_v8 = vadd.f32 %v125_v7, %v49_v6 }
  0xc7   :  { %v3228_v9 = vpop.f32.mrf.mxu0 }
  0xc8   :  { %3229 = vmatprep.subr.mxu1 %v3854_v8 }
  0xc9   :  { %3230 = vmatpush3.msra.mxu1 %v3854_v8 }
  0xca   :  { %3232 = vmatmul.mubr.msk.f32.vlgmr.msra.gmra.mxu1 %vm254_vm3, %v3859_v10  ;;  %3290 = vmatprep.subr.mxu1 %v4964_v2 }
  0xcb   :  { %3291 = vmatpush3.msra.mxu1 %v3854_v8  ;;  %3234 = vmatprep.mubr.msk.f32.mxu1 %vm254_vm3, %v3865_v11 }
  0xcc   :  { %3327 = vmatprep.subr.mxu1 %v4964_v2 }
  0xce   :  { %3235 = vmatmul.mubr.msk.f32.gmra.mxu1 %vm254_vm3, %v3877_v12 }
  0xcf   :  { %3237 = vmatprep.mubr.msk.f32.mxu1 %vm254_vm3, %v3882_v13 }
  0xd2   :  { %3238 = vmatmul.mubr.msk.f32.gmra.mxu1 %vm254_vm3, %v3892_v14 }
  0xd3   :  { %3240 = vmatprep.mubr.msk.f32.mxu1 %vm254_vm3, %v3897_v15 }
  0xd6   :  { %3241 = vmatmul.mubr.msk.f32.gmra.mxu1 %vm254_vm3, %v3906_v16 }
  0xd7   :  { %3243 = vmatprep.mubr.msk.f32.mxu1 %vm254_vm3, %v3911_v17 }
  0xda   :  { %3244 = vmatmul.mubr.msk.f32.gmra.mxu1 %vm254_vm3, %v3920_v18 }
  0xdb   :  { %3246 = vmatprep.mubr.msk.f32.mxu1 %vm254_vm3, %v3925_v19 }
  0xde   :  { %3247 = vmatmul.mubr.msk.f32.gmra.mxu1 %vm254_vm3, %v3934_v20 }
  0xdf   :  { %3249 = vmatprep.mubr.msk.f32.mxu1 %vm254_vm3, %v3939_v21 }
  0xe2   :  { %3250 = vmatmul.mubr.msk.f32.gmra.mxu1 %vm254_vm3, %v3948_v22 }
  0xe3   :  { %3252 = vmatprep.mubr.msk.f32.mxu1 %vm254_vm3, %v3953_v23 }
  0xe6   :  { %3253 = vmatmul.mubr.msk.f32.gmra.mxu1 %vm254_vm3, %v3962_v24 }
  0xe7   :  { %3292 = vmatprep.mubr.msk.f32.mxu1 %vm3767_vm1, %v4964_v2 }
  0xea   :  { %3293 = vmatmul.mubr.msk.f32.vlgmr.msra.gmra.mxu1 %vm254_vm3, %v3971_v25 }
  0xeb   :  { %3295 = vmatprep.mubr.msk.f32.mxu1 %vm3767_vm1, %v4964_v2 }
  0xee   :  { %3296 = vmatmul.mubr.msk.f32.gmra.mxu1 %vm254_vm3, %v3980_v26 }
  0xef   :  { %3298 = vmatprep.mubr.msk.f32.mxu1 %vm3767_vm1, %v4964_v2 }
  0xf2   :  { %3299 = vmatmul.mubr.msk.f32.gmra.mxu1 %vm254_vm3, %v3989_v27 }
  0xf3   :  { %3359 = vmatprep.mubr.msk.f32.mxu1 %vm3767_vm1, %v4964_v2 }
 0x18a   :  { %v3995_v28 = vpop.f32.mrf.mxu1 }
 0x18c   :  { %v3997_v29 = vpop.f32.mrf.mxu1 }
 0x18e   :  { %v3999_v30 = vpop.f32.mrf.mxu1 }
 0x190   :  { %v4001_v31 = vpop.f32.mrf.mxu1 }
 0x192   :  { %v4003_v32 = vpop.f32.mrf.mxu1 }
 0x194   :  { %v4005_v33 = vpop.f32.mrf.mxu1 }
 0x196   :  { %v4007_v34 = vpop.f32.mrf.mxu1 }
 0x198   :  { %v4009_v35 = vpop.f32.mrf.mxu1 }
 0x19a   :  { %v4011_v36 = vpop.f32.mrf.mxu1 }
 0x19c   :  { %v4013_v37 = vpop.f32.mrf.mxu1 }
 0x19e   :  { %v4015_v38 = vpop.f32.mrf.mxu1 }
 0x1a0   :  { %v4017_v39 = vpop.f32.mrf.mxu1 }
 0x1a2   :  { %v4019_v40 = vpop.f32.mrf.mxu1 }
 0x1a4   :  { %v4021_v41 = vpop.f32.mrf.mxu1 }
 0x1a6   :  { %v3254_v42 = vpop.f32.mrf.mxu1 }
 0x1a8   :  { %v439_v43 = vpop.f32.mrf.mxu1 }
 0x1aa   :  { %v4023_v44 = vpop.f32.mrf.mxu1 }
 0x1ab   :  { %634 = vadd.xlane.f32.xlu1 %v4023_v44  ;;  %v643_v46 = vmul.f32 %v4023_v44, %v4023_v44 }
 0x1ac   :  { %v3294_v45 = vpop.f32.mrf.mxu1 }
 0x1ae   :  { %v4028_v47 = vpop.f32.mrf.mxu1 }
 0x1af   :  { %646 = vadd.xlane.f32.xlu1 %v643_v46  ;;  %636 = vadd.xlane.f32.xlu0 %v4028_v47  ;;  %v644_v48 = vmul.f32 %v4028_v47, %v4028_v47 }
 0x1b0   :  { %v3297_v49 = vpop.f32.mrf.mxu1 }
 0x1b2   :  { %v4033_v50 = vpop.f32.mrf.mxu1 }
 0x1b3   :  { %648 = vadd.xlane.f32.xlu1 %v644_v48  ;;  %v645_v52 = vmul.f32 %v4033_v50, %v4033_v50 }
 0x1b4   :  { %v3300_v51 = vpop.f32.mrf.mxu1 }
 0x1b7   :  { %638 = vadd.xlane.f32.xlu1 %v4033_v50 }
 0x1bb   :  { %650 = vadd.xlane.f32.xlu1 %v645_v52 }
 0x1c5   :  { %246 = vperm.xlu0 %3656, %v169_v53  }
 0x1cc   :  { %251 = vperm.xlu1 %3657, %v170_v54  }
 0x1d0   :  { %241 = vperm.xlu1 %3657, %v168_v55  }
 0x1d4   :  { %236 = vperm.xlu1 %3657, %v167_v56  }
 0x1d8   :  { %231 = vperm.xlu1 %3657, %v166_v57  }
 0x1dc   :  { %226 = vperm.xlu1 %3657, %v165_v58  }
 0x1e0   :  { %221 = vperm.xlu1 %3657, %v164_v59  }
 0x234   :  { %v635_v60 = vpop.xlane.xlu1 %634 }
 0x235   :  { %v640_v61 = vmul.f32 0.0078125, %v635_v60 }
 0x237   :  { %v655_v0 = vmul.f32 %v640_v61, %v640_v61 }
 0x238   :  { %v647_v62 = vpop.xlane.xlu1 %646  ;;  %v637_v63 = vpop.xlane.xlu0 %636 }
 0x239   :  { %v652_v1 = vmul.f32 0.0078125, %v647_v62  ;;  %v641_v3 = vmul.f32 0.0078125, %v637_v63  ;;  %v4068_v62 = vld [vmem:[%s4957_s5] sm:$0xff] }
 0x23b   :  { %v658_v4 = vsub.f32 %v652_v1, %v655_v0  ;;  %v656_v6 = vmul.f32 %v641_v3, %v641_v3 }
 0x23c   :  { %v649_v7 = vpop.xlane.xlu1 %648 }
 0x23d   :  { %v661_v9 = vadd.f32 1e-05, %v658_v4  ;;  %v653_v45 = vmul.f32 0.0078125, %v649_v7 }
 0x23f   :  { %3658 = vrsqrt.f32 %v661_v9  ;;  %v659_v46 = vsub.f32 %v653_v45, %v656_v6 }
 0x240   :  { %v639_v48 = vpop.xlane.xlu1 %638  ;;  %v4059_v55 = vpop.permute.xlu0 %246 }
 0x241   :  { %v662_v49 = vadd.f32 1e-05, %v659_v46  ;;  %v642_v51 = vmul.f32 0.0078125, %v639_v48  ;;  %v440_v60 = vadd.f32 %v439_v43, %v4059_v55  ;;  %v4084_v43 = vld [vmem:[%s4957_s5 + $0x8] sm:$0xff] }
 0x243   :  { %3660 = vrsqrt.f32 %v662_v49  ;;  %v657_v53 = vmul.f32 %v642_v51, %v642_v51  ;;  %v462_v6 = vmax.f32 %v440_v60, 0.0 }
 0x244   :  { %v651_v52 = vpop.xlane.xlu1 %650 }
 0x245   :  { %v654_v54 = vmul.f32 0.0078125, %v651_v52 }
 0x247   :  { %v660_v56 = vsub.f32 %v654_v54, %v657_v53  ;;  %v4097_v53 = vld [vmem:[%s4958_s6 + $0x8] sm:$0xff] }
 0x248   :  { %v4061_v57 = vpop.permute.xlu1 %251 }
 0x249   :  { %v663_v58 = vadd.f32 1e-05, %v660_v56  ;;  %v445_v59 = vadd.f32 %v3254_v42, %v4061_v57  ;;  %v4079_v42 = vld [vmem:[%s4958_s6] sm:$0xff] }
 0x24b   :  { %3662 = vrsqrt.f32 %v663_v58  ;;  %v463_v63 = vmax.f32 %v445_v59, 0.0 }
 0x24c   :  { %v3659_v0 = vpop.eup %3658  ;;  %v4070_v1 = vpop.permute.xlu1 %241 }
 0x24d   :  { %3256 = vmatpush3.msra.mxu0 %v463_v63  ;;  %v667_v4 = vmul.f32 %v3659_v0, %v4068_v62  ;;  %v435_v7 = vadd.f32 %v4019_v40, %v4070_v1 }
 0x24e   :  { %3257 = vmatprep.subr.mxu0 %v4964_v2 }
 0x24f   :  { %678 = vperm.xlu0 %3656, %v667_v4   ;;  %3258 = vmatpush3.msra.mxu0 %v462_v6  ;;  %v461_v9 = vmax.f32 %v435_v7, 0.0  ;;  %v670_v45 = vmul.f32 %v667_v4, %v640_v61  ;;  %v4122_v6 = vld [vmem:[%s4958_s6 + $0x10] sm:$0xff] }
 0x250   :  { %v3661_v46 = vpop.eup %3660  ;;  %3259 = vmatprep.subr.mxu0 %v4964_v2  ;;  %v4087_v40 = vpop.permute.xlu1 %236 }
 0x251   :  { %3260 = vmatpush3.msra.mxu0 %v461_v9  ;;  %v673_v48 = vsub.f32 %v4079_v42, %v670_v45  ;;  %v668_v49 = vmul.f32 %v3661_v46, %v4084_v43  ;;  %v430_v52 = vadd.f32 %v4021_v41, %v4087_v40  ;;  %v4108_v41 = vld [vmem:[%s4957_s5 + $0x10] sm:$0xff] }
 0x252   :  { %3261 = vmatprep.subr.mxu0 %v4964_v2  ;;  %v161_v46 = vld [vmem:[%s4960_s8 + $0x30] sm:$0xff] }
 0x253   :  { %696 = vperm.xlu0 %3656, %v673_v48   ;;  %683 = vperm.xlu1 %3657, %v668_v49   ;;  %v460_v61 = vmax.f32 %v430_v52, 0.0  ;;  %v671_v54 = vmul.f32 %v668_v49, %v641_v3  ;;  %v163_v3 = vld [vmem:[%s4960_s8 + $0x40] sm:$0xff]  ;;  %v162_v52 = vld [vmem:[%s4960_s8 + $0x38] sm:$0xff] }
 0x254   :  { %v4099_v56 = vpop.permute.xlu1 %231 }
 0x255   :  { %3262 = vmatpush3.msra.mxu0 %v460_v61  ;;  %v674_v58 = vsub.f32 %v4097_v53, %v671_v54  ;;  %v425_v59 = vadd.f32 %v4015_v38, %v4099_v56  ;;  %v160_v61 = vld [vmem:[%s4960_s8 + $0x28] sm:$0xff]  ;;  %v155_v54 = vld [vmem:[%s4960_s8] sm:$0xff] }
 0x256   :  { %3263 = vmatprep.subr.mxu0 %v4964_v2 }
 0x257   :  { %701 = vperm.xlu0 %3656, %v674_v58   ;;  %v459_v60 = vmax.f32 %v425_v59, 0.0  ;;  %v158_v58 = vld [vmem:[%s4960_s8 + $0x18] sm:$0xff]  ;;  %v156_v59 = vld [vmem:[%s4960_s8 + $0x8] sm:$0xff] }
 0x258   :  { %v3663_v63 = vpop.eup %3662  ;;  %v4110_v0 = vpop.permute.xlu1 %226 }
 0x259   :  { %3264 = vmatpush3.msra.mxu0 %v459_v60  ;;  %v669_v4 = vmul.f32 %v3663_v63, %v4108_v41  ;;  %v420_v38 = vadd.f32 %v4017_v39, %v4110_v0 }
 0x25a   :  { %3265 = vmatprep.subr.mxu0 %v4964_v2 }
 0x25b   :  { %216 = vperm.xlu0 %3656, %v163_v3   ;;  %688 = vperm.xlu1 %3657, %v669_v4   ;;  %v458_v7 = vmax.f32 %v420_v38, 0.0  ;;  %v672_v9 = vmul.f32 %v669_v4, %v642_v51  ;;  %v159_v51 = vld [vmem:[%s4960_s8 + $0x20] sm:$0xff] }
 0x25c   :  { %v4124_v45 = vpop.permute.xlu1 %221 }
 0x25d   :  { %3266 = vmatpush3.msra.mxu0 %v458_v7  ;;  %v675_v39 = vsub.f32 %v4122_v6, %v672_v9  ;;  %v415_v48 = vadd.f32 %v4011_v36, %v4124_v45  ;;  %v157_v36 = vld [vmem:[%s4960_s8 + $0x10] sm:$0xff] }
 0x25e   :  { %3267 = vmatprep.subr.mxu0 %v4964_v2 }
 0x25f   :  { %206 = vperm.xlu0 %3656, %v161_v46   ;;  %706 = vperm.xlu1 %3657, %v675_v39   ;;  %v457_v49 = vmax.f32 %v415_v48, 0.0  ;;  %v716_v48 = vlaneseq }
 0x261   :  { %3268 = vmatpush3.msra.mxu0 %v457_v49 }
 0x262   :  { %3269 = vmatprep.subr.mxu0 %v4964_v2 }
 0x263   :  { %196 = vperm.xlu0 %3656, %v159_v51   ;;  %211 = vperm.xlu1 %3657, %v162_v52  }
 0x267   :  { %186 = vperm.xlu0 %3656, %v157_v36   ;;  %201 = vperm.xlu1 %3657, %v160_v61  }
 0x26b   :  { %176 = vperm.xlu0 %3656, %v155_v54   ;;  %191 = vperm.xlu1 %3657, %v158_v58  }
 0x26f   :  { %181 = vperm.xlu1 %3657, %v156_v59  }
 0x2ca   :  { %v679_v60 = vpop.permute.xlu0 %678 }
 0x2cb   :  { %v691_v9 = vmul.f32 %v679_v60, %v4023_v44 }
 0x2ce   :  { %v697_v63 = vpop.permute.xlu0 %696  ;;  %v684_v3 = vpop.permute.xlu1 %683 }
 0x2cf   :  { %v692_v4 = vmul.f32 %v684_v3, %v4028_v47  ;;  %v709_v51 = vadd.f32 %v697_v63, %v691_v9  ;;  %v717_v47 = vshrl.u32 %v716_v48, 7  ;;  %v715_v63 = vld [vmem:[%s4952_s0] sm:$0x3] }
 0x2d1   :  { %v4169_v60 = vsub.s32 0, %v717_v47 }
 0x2d2   :  { %v702_v38 = vpop.permute.xlu0 %701 }
 0x2d3   :  { %v710_v7 = vadd.f32 %v702_v38, %v692_v4 }
 0x2d5   :  { %3664 = vtanh.f32 %v710_v7  ;;  %v719_v7 = vrot.slane %v715_v63, %v4169_v60 }
 0x2d6   :  { %v4157_v46 = vpop.permute.xlu0 %216  ;;  %v689_v39 = vpop.permute.xlu1 %688  ;;  %3666 = vtanh.f32 %v709_v51 }
 0x2d7   :  { %v410_v49 = vadd.f32 %v4013_v37, %v4157_v46  ;;  %v693_v52 = vmul.f32 %v689_v39, %v4033_v50 }
 0x2d9   :  { %v456_v36 = vmax.f32 %v410_v49, 0.0 }
 0x2da   :  { %v4162_v61 = vpop.permute.xlu0 %206  ;;  %v707_v54 = vpop.permute.xlu1 %706 }
 0x2db   :  { %v711_v58 = vadd.f32 %v707_v54, %v693_v52  ;;  %3270 = vmatpush3.msra.mxu0 %v456_v36  ;;  %v400_v50 = vadd.f32 %v4009_v35, %v4162_v61  ;;  %v4187_v35 = vsub.s32 1, %v717_v47 }
 0x2dc   :  { %3271 = vmatprep.subr.mxu0 %v4964_v2 }
 0x2dd   :  { %3668 = vtanh.f32 %v711_v58  ;;  %v454_v9 = vmax.f32 %v400_v50, 0.0  ;;  %v725_v54 = vrot.slane %v715_v63, %v4187_v35 }
 0x2de   :  { %v4165_v44 = vpop.permute.xlu0 %196  ;;  %v4167_v59 = vpop.permute.xlu1 %211 }
 0x2df   :  { %v405_v37 = vadd.f32 %v4007_v34, %v4167_v59  ;;  %v390_v34 = vadd.f32 %v4005_v33, %v4165_v44 }
 0x2e1   :  { %v455_v3 = vmax.f32 %v405_v37, 0.0  ;;  %v452_v36 = vmax.f32 %v390_v34, 0.0 }
 0x2e2   :  { %v4178_v4 = vpop.permute.xlu0 %186  ;;  %v4180_v38 = vpop.permute.xlu1 %201 }
 0x2e3   :  { %3272 = vmatpush3.msra.mxu0 %v455_v3  ;;  %v395_v39 = vadd.f32 %v4003_v32, %v4180_v38  ;;  %v3665_v48 = vpop.eup %3664  ;;  %v380_v52 = vadd.f32 %v4001_v31, %v4178_v4 }
 0x2e4   :  { %3273 = vmatprep.subr.mxu0 %v4964_v2  ;;  %v720_v33 = vmul.f32 %v3665_v48, %v719_v7  ;;  %v3667_v58 = vpop.eup %3666 }
 0x2e5   :  { %3274 = vmatpush3.msra.mxu0 %v454_v9  ;;  %v453_v49 = vmax.f32 %v395_v39, 0.0  ;;  %v450_v31 = vmax.f32 %v380_v52, 0.0 }
 0x2e6   :  { %3275 = vmatprep.subr.mxu0 %v4964_v2  ;;  %v4191_v51 = vpop.permute.xlu1 %191  ;;  %v4198_v47 = vpop.permute.xlu0 %176  ;;  %v721_v7 = vadd.f32 %v3667_v58, %v720_v33 }
 0x2e7   :  { %3276 = vmatpush3.msra.mxu0 %v453_v49  ;;  %v385_v32 = vadd.f32 %v3999_v30, %v4191_v51  ;;  %v370_v63 = vadd.f32 %v3997_v29, %v4198_v47  ;;  %v4213_v49 = vld [vmem:[%s4961_s9] sm:$0xf] }
 0x2e8   :  { %3277 = vmatprep.subr.mxu0 %v4964_v2 }
 0x2e9   :  { %3278 = vmatpush3.msra.mxu0 %v452_v36  ;;  %v451_v37 = vmax.f32 %v385_v32, 0.0  ;;  %v448_v48 = vmax.f32 %v370_v63, 0.0 }
 0x2ea   :  { %v3669_v50 = vpop.eup %3668  ;;  %3279 = vmatprep.subr.mxu0 %v4964_v2  ;;  %v4202_v3 = vpop.permute.xlu1 %181 }
 0x2eb   :  { %3280 = vmatpush3.msra.mxu0 %v451_v37  ;;  %v375_v30 = vadd.f32 %v3995_v28, %v4202_v3  ;;  %v726_v9 = vmul.f32 %v3669_v50, %v725_v54 }
 0x2ec   :  { %3281 = vmatprep.subr.mxu0 %v4964_v2 }
 0x2ed   :  { %3282 = vmatpush3.msra.mxu0 %v450_v31  ;;  %v449_v39 = vmax.f32 %v375_v30, 0.0  ;;  %v727_v34 = vadd.f32 %v726_v9, %v721_v7 }
 0x2ee   :  { %3283 = vmatprep.subr.mxu0 %v4964_v2 }
 0x2ef   :  { %3284 = vmatpush3.msra.mxu0 %v449_v39  ;;  %v728_v28 = vmul.f32 0.2, %v727_v34 }
 0x2f0   :  { %3285 = vmatprep.subr.mxu0 %v4964_v2 }
 0x2f1   :  { %3286 = vmatpush3.msra.mxu0 %v448_v48  ;;  %v4217_v29 = vadd.f32 %v728_v28, %v3854_v8 }
 0x2f2   :  { %3288 = vmatmul.mubr.f32.vlgmr.msra.gmra.mxu0 %v4213_v49 }
 0x2f3   :  { %3301 = vmatprep.subr.mxu0 %v4217_v29  ;;  %3303 = vmatprep.mubr.msk.f32.mxu0 %vm254_vm3, %v3850_v5 }
 0x2f4   :  { %3302 = vmatpush3.msra.mxu0 %v4217_v29 }
 0x2f5   :  { %3362 = vmatprep.subr.mxu0 %v4964_v2 }
 0x2f6   :  { %3304 = vmatmul.mubr.msk.f32.vlgmr.msra.gmra.mxu0 %vm254_vm3, %v3859_v10 }
 0x2f7   :  { %3363 = vmatpush3.msra.mxu0 %v4217_v29  ;;  %3306 = vmatprep.mubr.msk.f32.mxu0 %vm254_vm3, %v3865_v11 }
 0x2f8   :  { %3399 = vmatprep.subr.mxu0 %v4964_v2 }
 0x2fa   :  { %3307 = vmatmul.mubr.msk.f32.gmra.mxu0 %vm254_vm3, %v3877_v12 }
 0x2fb   :  { %3309 = vmatprep.mubr.msk.f32.mxu0 %vm254_vm3, %v3882_v13 }
 0x2fe   :  { %3310 = vmatmul.mubr.msk.f32.gmra.mxu0 %vm254_vm3, %v3892_v14 }
 0x2ff   :  { %3312 = vmatprep.mubr.msk.f32.mxu0 %vm254_vm3, %v3897_v15 }
 0x302   :  { %3313 = vmatmul.mubr.msk.f32.gmra.mxu0 %vm254_vm3, %v3906_v16 }
 0x303   :  { %3315 = vmatprep.mubr.msk.f32.mxu0 %vm254_vm3, %v3911_v17 }
 0x306   :  { %3316 = vmatmul.mubr.msk.f32.gmra.mxu0 %vm254_vm3, %v3920_v18 }
 0x307   :  { %3318 = vmatprep.mubr.msk.f32.mxu0 %vm254_vm3, %v3925_v19 }
 0x30a   :  { %3319 = vmatmul.mubr.msk.f32.gmra.mxu0 %vm254_vm3, %v3934_v20 }
 0x30b   :  { %3321 = vmatprep.mubr.msk.f32.mxu0 %vm254_vm3, %v3939_v21 }
 0x30e   :  { %3322 = vmatmul.mubr.msk.f32.gmra.mxu0 %vm254_vm3, %v3948_v22 }
 0x30f   :  { %3324 = vmatprep.mubr.msk.f32.mxu0 %vm254_vm3, %v3953_v23  ;;  %v4986_v23 = vmov 0.0  }
 0x312   :  { %3325 = vmatmul.mubr.msk.f32.gmra.mxu0 %vm254_vm3, %v3962_v24 }
 0x313   :  { %3364 = vmatprep.mubr.msk.f32.mxu0 %vm3767_vm1, %v4964_v2 }
 0x316   :  { %3365 = vmatmul.mubr.msk.f32.vlgmr.msra.gmra.mxu0 %vm254_vm3, %v3971_v25 }
 0x317   :  { %3367 = vmatprep.mubr.msk.f32.mxu0 %vm3767_vm1, %v4964_v2 }
 0x31a   :  { %3368 = vmatmul.mubr.msk.f32.gmra.mxu0 %vm254_vm3, %v3980_v26 }
 0x31b   :  { %3370 = vmatprep.mubr.msk.f32.mxu0 %vm3767_vm1, %v4964_v2 }
 0x31e   :  { %3371 = vmatmul.mubr.msk.f32.gmra.mxu0 %vm254_vm3, %v3989_v27 }
 0x31f   :  { %3431 = vmatprep.mubr.msk.f32.mxu0 %vm3767_vm1, %v4964_v2 }
 0x3b2   :  { %v4271_v8 = vpop.f32.mrf.mxu0 }
 0x3b3   :  { %4985 = vst [vmem:[#allocation13_spill] sm:$0xff] %v4271_v8 }
 0x3b4   :  { %v3289_v52 = vpop.f32.mrf.mxu0 }
 0x3b6   :  { %v4273_v36 = vpop.f32.mrf.mxu0 }
 0x3b8   :  { %v4275_v32 = vpop.f32.mrf.mxu0 }
 0x3ba   :  { %v4277_v33 = vpop.f32.mrf.mxu0 }
 0x3bc   :  { %v4279_v54 = vpop.f32.mrf.mxu0 }
 0x3be   :  { %v3311_v58 = vpop.f32.mrf.mxu0 }
 0x3c0   :  { %v818_v37 = vpop.f32.mrf.mxu0 }
 0x3c2   :  { %v3314_v50 = vpop.f32.mrf.mxu0 }
 0x3c4   :  { %v828_v31 = vpop.f32.mrf.mxu0 }
 0x3c6   :  { %v3317_v30 = vpop.f32.mrf.mxu0 }
 0x3c8   :  { %v838_v63 = vpop.f32.mrf.mxu0 }
 0x3ca   :  { %v3320_v7 = vpop.f32.mrf.mxu0 }
 0x3cc   :  { %v848_v9 = vpop.f32.mrf.mxu0 }
 0x3ce   :  { %v3323_v39 = vpop.f32.mrf.mxu0 }
 0x3cf   :  { %v864_v2 = vadd.f32 %v3323_v39, %v4070_v1 }
 0x3d0   :  { %v858_v34 = vpop.f32.mrf.mxu0 }
 0x3d1   :  { %v859_v25 = vadd.f32 %v858_v34, %v4087_v40  ;;  %v890_v21 = vmax.f32 %v864_v2, 0.0 }
 0x3d2   :  { %v3326_v48 = vpop.f32.mrf.mxu0 }
 0x3d3   :  { %v874_v28 = vadd.f32 %v3326_v48, %v4061_v57  ;;  %v854_v48 = vadd.f32 %v3320_v7, %v4099_v56 }
 0x3d4   :  { %v868_v52 = vpop.f32.mrf.mxu0 }
 0x3d5   :  { %v892_v8 = vmax.f32 %v874_v28, 0.0  ;;  %v869_v27 = vadd.f32 %v868_v52, %v4059_v55  ;;  %v889_v28 = vmax.f32 %v859_v25, 0.0 }
 0x3d6   :  { %v4284_v26 = vpop.f32.mrf.mxu0 }
 0x3d7   :  { %v891_v24 = vmax.f32 %v869_v27, 0.0  ;;  %3328 = vmatpush3.msra.mxu1 %v892_v8  ;;  %1059 = vadd.xlane.f32.xlu0 %v4284_v26  ;;  %v849_v27 = vadd.f32 %v848_v9, %v4110_v0  ;;  %v1068_v34 = vmul.f32 %v4284_v26, %v4284_v26 }
 0x3d8   :  { %3329 = vmatprep.subr.mxu1 %v4986_v23  ;;  %v3366_v22 = vpop.f32.mrf.mxu0 }
 0x3d9   :  { %3330 = vmatpush3.msra.mxu1 %v891_v24  ;;  %v844_v22 = vadd.f32 %v3317_v30, %v4124_v45  ;;  %v888_v24 = vmax.f32 %v854_v48, 0.0  ;;  %v887_v25 = vmax.f32 %v849_v27, 0.0  ;;  %v834_v30 = vadd.f32 %v3314_v50, %v4167_v59 }
 0x3da   :  { %3331 = vmatprep.subr.mxu1 %v4986_v23  ;;  %v4291_v39 = vpop.f32.mrf.mxu0  ;;  %v824_v27 = vadd.f32 %v3311_v58, %v4180_v38  ;;  %v819_v50 = vadd.f32 %v818_v37, %v4165_v44  ;;  %v809_v58 = vadd.f32 %v4279_v54, %v4178_v4  ;;  %v804_v37 = vadd.f32 %v4273_v36, %v4202_v3 }
 0x3db   :  { %1061 = vadd.xlane.f32.xlu1 %v4291_v39  ;;  %3332 = vmatpush3.msra.mxu1 %v890_v21  ;;  %v1069_v2 = vmul.f32 %v4291_v39, %v4291_v39  ;;  %v839_v21 = vadd.f32 %v838_v63, %v4157_v46  ;;  %v886_v52 = vmax.f32 %v844_v22, 0.0  ;;  %v829_v63 = vadd.f32 %v828_v31, %v4162_v61 }
 0x3dc   :  { %3333 = vmatprep.subr.mxu1 %v4986_v23  ;;  %v3369_v8 = vpop.f32.mrf.mxu0  ;;  %v814_v31 = vadd.f32 %v4277_v33, %v4191_v51  ;;  %v882_v22 = vmax.f32 %v824_v27, 0.0  ;;  %v799_v33 = vadd.f32 %v4275_v32, %v4198_v47 }
 0x3dd   :  { %3334 = vmatpush3.msra.mxu1 %v889_v28  ;;  %v885_v28 = vmax.f32 %v839_v21, 0.0  ;;  %v884_v8 = vmax.f32 %v834_v30, 0.0 }
 0x3de   :  { %3335 = vmatprep.subr.mxu1 %v4986_v23  ;;  %v4300_v7 = vpop.f32.mrf.mxu0  ;;  %v880_v21 = vmax.f32 %v814_v31, 0.0  ;;  %v877_v54 = vmax.f32 %v799_v33, 0.0 }
 0x3df   :  { %1073 = vadd.xlane.f32.xlu1 %v1069_v2  ;;  %1063 = vadd.xlane.f32.xlu0 %v4300_v7  ;;  %v1070_v48 = vmul.f32 %v4300_v7, %v4300_v7  ;;  %v883_v2 = vmax.f32 %v829_v63, 0.0 }
 0x3e0   :  { %3336 = vmatpush3.msra.mxu1 %v888_v24  ;;  %v3372_v9 = vpop.f32.mrf.mxu0  ;;  %v881_v24 = vmax.f32 %v819_v50, 0.0 }
 0x3e1   :  { %3337 = vmatprep.subr.mxu1 %v4986_v23  ;;  %v878_v9 = vmax.f32 %v804_v37, 0.0 }
 0x3e2   :  { %3338 = vmatpush3.msra.mxu1 %v887_v25  ;;  %v879_v25 = vmax.f32 %v809_v58, 0.0 }
 0x3e3   :  { %3339 = vmatprep.subr.mxu1 %v4986_v23  ;;  %1071 = vadd.xlane.f32.xlu0 %v1068_v34 }
 0x3e4   :  { %1075 = vadd.xlane.f32.xlu1 %v1070_v48  ;;  %3340 = vmatpush3.msra.mxu1 %v886_v52 }
 0x3e5   :  { %3341 = vmatprep.subr.mxu1 %v4986_v23 }
 0x3e6   :  { %3342 = vmatpush3.msra.mxu1 %v885_v28 }
 0x3e7   :  { %3343 = vmatprep.subr.mxu1 %v4986_v23 }
 0x3e8   :  { %3344 = vmatpush3.msra.mxu1 %v884_v8 }
 0x3e9   :  { %3345 = vmatprep.subr.mxu1 %v4986_v23 }
 0x3ea   :  { %3346 = vmatpush3.msra.mxu1 %v883_v2 }
 0x3eb   :  { %3347 = vmatprep.subr.mxu1 %v4986_v23 }
 0x3ec   :  { %3348 = vmatpush3.msra.mxu1 %v882_v22 }
 0x3ed   :  { %3349 = vmatprep.subr.mxu1 %v4986_v23 }
 0x3ee   :  { %3350 = vmatpush3.msra.mxu1 %v881_v24 }
 0x3ef   :  { %3351 = vmatprep.subr.mxu1 %v4986_v23 }
 0x3f0   :  { %3352 = vmatpush3.msra.mxu1 %v880_v21 }
 0x3f1   :  { %3353 = vmatprep.subr.mxu1 %v4986_v23 }
 0x3f2   :  { %3354 = vmatpush3.msra.mxu1 %v879_v25 }
 0x3f3   :  { %3355 = vmatprep.subr.mxu1 %v4986_v23 }
 0x3f4   :  { %3356 = vmatpush3.msra.mxu1 %v878_v9 }
 0x3f5   :  { %3357 = vmatprep.subr.mxu1 %v4986_v23 }
 0x3f6   :  { %3358 = vmatpush3.msra.mxu1 %v877_v54 }
 0x3f7   :  { %3360 = vmatmul.mubr.f32.vlgmr.msra.gmra.mxu1 %v4213_v49 }
 0x3f8   :  { %3375 = vmatprep.mubr.msk.f32.mxu1 %vm254_vm3, %v3850_v5 }
 0x460   :  { %v1060_v36 = vpop.xlane.xlu0 %1059 }
 0x461   :  { %v1065_v48 = vmul.f32 0.0078125, %v1060_v36 }
 0x463   :  { %v1080_v2 = vmul.f32 %v1065_v48, %v1065_v48 }
 0x464   :  { %v1062_v32 = vpop.xlane.xlu1 %1061 }
 0x465   :  { %v1066_v34 = vmul.f32 0.0078125, %v1062_v32 }
 0x467   :  { %v1081_v63 = vmul.f32 %v1066_v34, %v1066_v34 }
 0x468   :  { %v1074_v30 = vpop.xlane.xlu1 %1073  ;;  %v1064_v52 = vpop.xlane.xlu0 %1063 }
 0x469   :  { %v1078_v28 = vmul.f32 0.0078125, %v1074_v30  ;;  %v1067_v27 = vmul.f32 0.0078125, %v1064_v52 }
 0x46b   :  { %v1084_v8 = vsub.f32 %v1078_v28, %v1081_v63  ;;  %v1082_v24 = vmul.f32 %v1067_v27, %v1067_v27 }
 0x46c   :  { %v1072_v50 = vpop.xlane.xlu0 %1071 }
 0x46d   :  { %v1087_v31 = vadd.f32 1e-05, %v1084_v8  ;;  %v1077_v22 = vmul.f32 0.0078125, %v1072_v50  ;;  %v1076_v58 = vpop.xlane.xlu1 %1075 }
 0x46e   :  { %v1079_v37 = vmul.f32 0.0078125, %v1076_v58 }
 0x46f   :  { %3670 = vrsqrt.f32 %v1087_v31  ;;  %v1083_v21 = vsub.f32 %v1077_v22, %v1080_v2 }
 0x470   :  { %v1085_v5 = vsub.f32 %v1079_v37, %v1082_v24 }
 0x471   :  { %v1086_v33 = vadd.f32 1e-05, %v1083_v21 }
 0x472   :  { %v1088_v25 = vadd.f32 1e-05, %v1085_v5 }
 0x473   :  { %3672 = vrsqrt.f32 %v1086_v33 }
 0x474   :  { %3674 = vrsqrt.f32 %v1088_v25 }
 0x47c   :  { %v3671_v9 = vpop.eup %3670 }
 0x47d   :  { %v1093_v54 = vmul.f32 %v3671_v9, %v4084_v43 }
 0x47f   :  { %1108 = vperm.xlu0 %3656, %v1093_v54   ;;  %v1096_v36 = vmul.f32 %v1093_v54, %v1066_v34 }
 0x480   :  { %v3673_v32 = vpop.eup %3672 }
 0x481   :  { %v3675_v30 = vpop.eup %3674  ;;  %v1099_v52 = vsub.f32 %v4097_v53, %v1096_v36  ;;  %v1092_v63 = vmul.f32 %v3673_v32, %v4068_v62  ;;  %v2917_v32 = vld [vmem:[%s4952_s0 + $0x2] sm:$0x3] }
 0x482   :  { %v1094_v28 = vmul.f32 %v3675_v30, %v4108_v41  ;;  %v1145_v30 = vrot.slane %v2917_v32, %v4169_v60 }
 0x483   :  { %1126 = vperm.xlu0 %3656, %v1099_v52   ;;  %1103 = vperm.xlu1 %3657, %v1092_v63   ;;  %v1095_v50 = vmul.f32 %v1092_v63, %v1065_v48  ;;  %v1151_v52 = vrot.slane %v2917_v32, %v4187_v35 }
 0x484   :  { %v1097_v8 = vmul.f32 %v1094_v28, %v1067_v27 }
 0x485   :  { %v1098_v31 = vsub.f32 %v4079_v42, %v1095_v50 }
 0x486   :  { %v1100_v2 = vsub.f32 %v4122_v6, %v1097_v8 }
 0x487   :  { %1113 = vperm.xlu1 %3657, %v1094_v28  }
 0x488   :  { %1131 = vperm.xlu0 %3656, %v1100_v2  }
 0x48b   :  { %1121 = vperm.xlu1 %3657, %v1098_v31  }
 0x4b7   :  { %v4340_v34 = vpop.f32.mrf.mxu1 }
 0x4b8   :  { %4987 = vst [vmem:[#allocation14_spill] sm:$0xff] %v4340_v34 }
 0x4b9   :  { %v3361_v22 = vpop.f32.mrf.mxu1 }
 0x4fa   :  { %v1109_v58 = vpop.permute.xlu0 %1108 }
 0x4fb   :  { %v1117_v21 = vmul.f32 %v1109_v58, %v4291_v39 }
 0x4fe   :  { %v1127_v24 = vpop.permute.xlu0 %1126  ;;  %v1104_v37 = vpop.permute.xlu1 %1103 }
 0x4ff   :  { %v1135_v5 = vadd.f32 %v1127_v24, %v1117_v21  ;;  %v1116_v25 = vmul.f32 %v1104_v37, %v4284_v26 }
 0x501   :  { %3676 = vtanh.f32 %v1135_v5 }
 0x502   :  { %v1114_v33 = vpop.permute.xlu1 %1113 }
 0x503   :  { %v1118_v27 = vmul.f32 %v1114_v33, %v4300_v7  ;;  %v1132_v48 = vpop.permute.xlu0 %1131 }
 0x505   :  { %v1136_v9 = vadd.f32 %v1132_v48, %v1118_v27 }
 0x506   :  { %v1122_v54 = vpop.permute.xlu1 %1121 }
 0x507   :  { %3678 = vtanh.f32 %v1136_v9  ;;  %v1134_v36 = vadd.f32 %v1122_v54, %v1116_v25 }
 0x509   :  { %3680 = vtanh.f32 %v1134_v36 }
 0x50e   :  { %v3677_v39 = vpop.eup %3676 }
 0x50f   :  { %v1146_v7 = vmul.f32 %v3677_v39, %v1145_v30 }
 0x514   :  { %v3679_v63 = vpop.eup %3678 }
 0x515   :  { %v1152_v50 = vmul.f32 %v3679_v63, %v1151_v52 }
 0x516   :  { %v3681_v28 = vpop.eup %3680 }
 0x517   :  { %v1147_v8 = vadd.f32 %v3681_v28, %v1146_v7 }
 0x519   :  { %v1153_v26 = vadd.f32 %v1152_v50, %v1147_v8 }
 0x51b   :  { %v1154_v2 = vmul.f32 0.2, %v1153_v26 }
 0x51d   :  { %v4351_v31 = vadd.f32 %v1154_v2, %v4217_v29 }
 0x51f   :  { %3373 = vmatprep.subr.mxu1 %v4351_v31 }
 0x520   :  { %3374 = vmatpush3.msra.mxu1 %v4351_v31 }
 0x521   :  { %3376 = vmatmul.mubr.msk.f32.vlgmr.msra.gmra.mxu1 %vm254_vm3, %v3859_v10  ;;  %3434 = vmatprep.subr.mxu1 %v4986_v23  ;;  %v4988_v10 = vld [vmem:[#allocation6_spill] sm:$0xff] }
 0x522   :  { %3435 = vmatpush3.msra.mxu1 %v4351_v31  ;;  %3378 = vmatprep.mubr.msk.f32.mxu1 %vm254_vm3, %v3865_v11  ;;  %v4989_v11 = vld [vmem:[#allocation7_spill] sm:$0xff] }
 0x523   :  { %3471 = vmatprep.subr.mxu1 %v4986_v23 }
 0x525   :  { %3379 = vmatmul.mubr.msk.f32.gmra.mxu1 %vm254_vm3, %v3877_v12  ;;  %v4990_v12 = vld [vmem:[#allocation8_spill] sm:$0xff] }
 0x526   :  { %3381 = vmatprep.mubr.msk.f32.mxu1 %vm254_vm3, %v3882_v13  ;;  %v4991_v13 = vld [vmem:[#allocation9_spill] sm:$0xff] }
 0x529   :  { %3382 = vmatmul.mubr.msk.f32.gmra.mxu1 %vm254_vm3, %v3892_v14  ;;  %v4992_v14 = vld [vmem:[#allocation10_spill] sm:$0xff] }
 0x52a   :  { %3384 = vmatprep.mubr.msk.f32.mxu1 %vm254_vm3, %v3897_v15  ;;  %v4993_v15 = vld [vmem:[#allocation11_spill] sm:$0xff] }
 0x52d   :  { %3385 = vmatmul.mubr.msk.f32.gmra.mxu1 %vm254_vm3, %v3906_v16  ;;  %v4994_v16 = vld [vmem:[#allocation12_spill] sm:$0xff] }
 0x52e   :  { %3387 = vmatprep.mubr.msk.f32.mxu1 %vm254_vm3, %v3911_v17 }
 0x531   :  { %3388 = vmatmul.mubr.msk.f32.gmra.mxu1 %vm254_vm3, %v3920_v18 }
 0x532   :  { %3390 = vmatprep.mubr.msk.f32.mxu1 %vm254_vm3, %v3925_v19 }
 0x535   :  { %3391 = vmatmul.mubr.msk.f32.gmra.mxu1 %vm254_vm3, %v3934_v20 }
 0x536   :  { %3393 = vmatprep.mubr.msk.f32.mxu1 %vm254_vm3, %v4988_v10 }
 0x539   :  { %3394 = vmatmul.mubr.msk.f32.gmra.mxu1 %vm254_vm3, %v4989_v11 }
 0x53a   :  { %3396 = vmatprep.mubr.msk.f32.mxu1 %vm254_vm3, %v4990_v12 }
 0x53d   :  { %3397 = vmatmul.mubr.msk.f32.gmra.mxu1 %vm254_vm3, %v4991_v13 }
 0x53e   :  { %3436 = vmatprep.mubr.msk.f32.mxu1 %vm3767_vm1, %v4986_v23 }
 0x541   :  { %3437 = vmatmul.mubr.msk.f32.vlgmr.msra.gmra.mxu1 %vm254_vm3, %v4992_v14 }
 0x542   :  { %3439 = vmatprep.mubr.msk.f32.mxu1 %vm3767_vm1, %v4986_v23 }
 0x545   :  { %3440 = vmatmul.mubr.msk.f32.gmra.mxu1 %vm254_vm3, %v4993_v15 }
 0x546   :  { %3442 = vmatprep.mubr.msk.f32.mxu1 %vm3767_vm1, %v4986_v23 }
 0x549   :  { %3443 = vmatmul.mubr.msk.f32.gmra.mxu1 %vm254_vm3, %v4994_v16 }
 0x54a   :  { %3503 = vmatprep.mubr.msk.f32.mxu1 %vm3767_vm1, %v4986_v23 }
 0x5e1   :  { %v4402_v17 = vpop.f32.mrf.mxu1 }
 0x5e3   :  { %v4404_v18 = vpop.f32.mrf.mxu1 }
 0x5e5   :  { %v4406_v19 = vpop.f32.mrf.mxu1 }
 0x5e7   :  { %v4408_v20 = vpop.f32.mrf.mxu1 }
 0x5e9   :  { %v3383_v29 = vpop.f32.mrf.mxu1 }
 0x5eb   :  { %v1244_v22 = vpop.f32.mrf.mxu1 }
 0x5ed   :  { %v3386_v58 = vpop.f32.mrf.mxu1 }
 0x5ef   :  { %v1254_v24 = vpop.f32.mrf.mxu1 }
 0x5f1   :  { %v3389_v37 = vpop.f32.mrf.mxu1 }
 0x5f2   :  { %v1270_v12 = vadd.f32 %v3389_v37, %v4124_v45  ;;  %v1260_v37 = vadd.f32 %v3386_v58, %v4167_v59  ;;  %v1245_v58 = vadd.f32 %v1244_v22, %v4165_v44  ;;  %v1230_v22 = vadd.f32 %v4402_v17, %v4202_v3  ;;  %v4464_v17 = vld [vmem:[%s4959_s7] sm:$0xff] }
 0x5f3   :  { %v1264_v21 = vpop.f32.mrf.mxu1 }
 0x5f4   :  { %v1265_v15 = vadd.f32 %v1264_v21, %v4157_v46  ;;  %v1255_v21 = vadd.f32 %v1254_v24, %v4162_v61  ;;  %v1240_v24 = vadd.f32 %v4406_v19, %v4191_v51  ;;  %v1225_v19 = vadd.f32 %v4404_v18, %v4198_v47 }
 0x5f5   :  { %v3392_v5 = vpop.f32.mrf.mxu1 }
 0x5f6   :  { %v1280_v8 = vadd.f32 %v3392_v5, %v4099_v56 }
 0x5f7   :  { %v1274_v33 = vpop.f32.mrf.mxu1 }
 0x5f8   :  { %v1275_v2 = vadd.f32 %v1274_v33, %v4110_v0  ;;  %v1314_v13 = vmax.f32 %v1280_v8, 0.0 }
 0x5f9   :  { %v3395_v27 = vpop.f32.mrf.mxu1 }
 0x5fa   :  { %v1290_v36 = vadd.f32 %v3395_v27, %v4070_v1  ;;  %v1313_v16 = vmax.f32 %v1275_v2, 0.0  ;;  %v1312_v27 = vmax.f32 %v1270_v12, 0.0 }
 0x5fb   :  { %v1284_v48 = vpop.f32.mrf.mxu1 }
 0x5fc   :  { %v1285_v52 = vadd.f32 %v1284_v48, %v4087_v40  ;;  %v1316_v28 = vmax.f32 %v1290_v36, 0.0  ;;  %v1309_v36 = vmax.f32 %v1255_v21, 0.0 }
 0x5fd   :  { %v3398_v25 = vpop.f32.mrf.mxu1 }
 0x5fe   :  { %v1300_v9 = vadd.f32 %v3398_v25, %v4061_v57  ;;  %v1315_v26 = vmax.f32 %v1285_v52, 0.0  ;;  %v1311_v25 = vmax.f32 %v1265_v15, 0.0  ;;  %v1306_v52 = vmax.f32 %v1240_v24, 0.0 }
 0x5ff   :  { %v1294_v54 = vpop.f32.mrf.mxu1 }
 0x600   :  { %v1318_v32 = vmax.f32 %v1300_v9, 0.0  ;;  %v1295_v30 = vadd.f32 %v1294_v54, %v4059_v55  ;;  %v1250_v9 = vadd.f32 %v3383_v29, %v4180_v38  ;;  %v1310_v54 = vmax.f32 %v1260_v37, 0.0 }
 0x601   :  { %v4413_v39 = vpop.f32.mrf.mxu1  ;;  %v1235_v29 = vadd.f32 %v4408_v20, %v4178_v4  ;;  %v1303_v20 = vmax.f32 %v1225_v19, 0.0 }
 0x602   :  { %v1317_v63 = vmax.f32 %v1295_v30, 0.0  ;;  %3400 = vmatpush3.msra.mxu0 %v1318_v32  ;;  %1485 = vadd.xlane.f32.xlu0 %v4413_v39  ;;  %v1494_v33 = vmul.f32 %v4413_v39, %v4413_v39  ;;  %v1308_v32 = vmax.f32 %v1250_v9, 0.0  ;;  %v1307_v30 = vmax.f32 %v1245_v58, 0.0 }
 0x603   :  { %3401 = vmatprep.subr.mxu0 %v4986_v23  ;;  %v3438_v7 = vpop.f32.mrf.mxu1 }
 0x604   :  { %3402 = vmatpush3.msra.mxu0 %v1317_v63  ;;  %v1305_v63 = vmax.f32 %v1235_v29, 0.0  ;;  %v1304_v7 = vmax.f32 %v1230_v22, 0.0 }
 0x605   :  { %3403 = vmatprep.subr.mxu0 %v4986_v23  ;;  %v4420_v50 = vpop.f32.mrf.mxu1 }
 0x606   :  { %1487 = vadd.xlane.f32.xlu1 %v4420_v50  ;;  %3404 = vmatpush3.msra.mxu0 %v1316_v28  ;;  %v1495_v11 = vmul.f32 %v4420_v50, %v4420_v50 }
 0x607   :  { %3405 = vmatprep.subr.mxu0 %v4986_v23  ;;  %v3441_v10 = vpop.f32.mrf.mxu1 }
 0x608   :  { %3406 = vmatpush3.msra.mxu0 %v1315_v26 }
 0x609   :  { %3407 = vmatprep.subr.mxu0 %v4986_v23  ;;  %v4429_v14 = vpop.f32.mrf.mxu1 }
 0x60a   :  { %1499 = vadd.xlane.f32.xlu1 %v1495_v11  ;;  %1489 = vadd.xlane.f32.xlu0 %v4429_v14  ;;  %v1496_v48 = vmul.f32 %v4429_v14, %v4429_v14 }
 0x60b   :  { %3408 = vmatpush3.msra.mxu0 %v1314_v13  ;;  %v3444_v5 = vpop.f32.mrf.mxu1 }
 0x60c   :  { %3409 = vmatprep.subr.mxu0 %v4986_v23 }
 0x60d   :  { %3410 = vmatpush3.msra.mxu0 %v1313_v16 }
 0x60e   :  { %3411 = vmatprep.subr.mxu0 %v4986_v23  ;;  %1497 = vadd.xlane.f32.xlu0 %v1494_v33 }
 0x60f   :  { %1501 = vadd.xlane.f32.xlu1 %v1496_v48  ;;  %3412 = vmatpush3.msra.mxu0 %v1312_v27 }
 0x610   :  { %3413 = vmatprep.subr.mxu0 %v4986_v23 }
 0x611   :  { %3414 = vmatpush3.msra.mxu0 %v1311_v25 }
 0x612   :  { %3415 = vmatprep.subr.mxu0 %v4986_v23 }
 0x613   :  { %3416 = vmatpush3.msra.mxu0 %v1310_v54 }
 0x614   :  { %3417 = vmatprep.subr.mxu0 %v4986_v23 }
 0x615   :  { %3418 = vmatpush3.msra.mxu0 %v1309_v36 }
 0x616   :  { %3419 = vmatprep.subr.mxu0 %v4986_v23 }
 0x617   :  { %3420 = vmatpush3.msra.mxu0 %v1308_v32 }
 0x618   :  { %3421 = vmatprep.subr.mxu0 %v4986_v23 }
 0x619   :  { %3422 = vmatpush3.msra.mxu0 %v1307_v30 }
 0x61a   :  { %3423 = vmatprep.subr.mxu0 %v4986_v23 }
 0x61b   :  { %3424 = vmatpush3.msra.mxu0 %v1306_v52 }
 0x61c   :  { %3425 = vmatprep.subr.mxu0 %v4986_v23 }
 0x61d   :  { %3426 = vmatpush3.msra.mxu0 %v1305_v63 }
 0x61e   :  { %3427 = vmatprep.subr.mxu0 %v4986_v23 }
 0x61f   :  { %3428 = vmatpush3.msra.mxu0 %v1304_v7 }
 0x620   :  { %3429 = vmatprep.subr.mxu0 %v4986_v23 }
 0x621   :  { %3430 = vmatpush3.msra.mxu0 %v1303_v20 }
 0x622   :  { %3432 = vmatmul.mubr.f32.vlgmr.msra.gmra.mxu0 %v4213_v49 }
 0x623   :  { %3447 = vmatprep.mubr.msk.f32.mxu0 %vm254_vm3, %v4464_v17 }
 0x68b   :  { %v1486_v18 = vpop.xlane.xlu0 %1485 }
 0x68c   :  { %v1491_v10 = vmul.f32 0.0078125, %v1486_v18 }
 0x68e   :  { %v1506_v49 = vmul.f32 %v1491_v10, %v1491_v10 }
 0x68f   :  { %v1488_v28 = vpop.xlane.xlu1 %1487 }
 0x690   :  { %v1492_v8 = vmul.f32 0.0078125, %v1488_v28 }
 0x692   :  { %v1507_v11 = vmul.f32 %v1492_v8, %v1492_v8 }
 0x693   :  { %v1500_v26 = vpop.xlane.xlu1 %1499  ;;  %v1490_v2 = vpop.xlane.xlu0 %1489 }
 0x694   :  { %v1504_v12 = vmul.f32 0.0078125, %v1500_v26  ;;  %v1493_v13 = vmul.f32 0.0078125, %v1490_v2 }
 0x696   :  { %v1510_v15 = vsub.f32 %v1504_v12, %v1507_v11  ;;  %v1508_v27 = vmul.f32 %v1493_v13, %v1493_v13 }
 0x697   :  { %v1498_v16 = vpop.xlane.xlu0 %1497 }
 0x698   :  { %v1513_v5 = vadd.f32 1e-05, %v1510_v15  ;;  %v1503_v33 = vmul.f32 0.0078125, %v1498_v16  ;;  %v1502_v37 = vpop.xlane.xlu1 %1501 }
 0x699   :  { %v1505_v48 = vmul.f32 0.0078125, %v1502_v37 }
 0x69a   :  { %3682 = vrsqrt.f32 %v1513_v5  ;;  %v1509_v21 = vsub.f32 %v1503_v33, %v1506_v49 }
 0x69b   :  { %v1511_v25 = vsub.f32 %v1505_v48, %v1508_v27 }
 0x69c   :  { %v1512_v9 = vadd.f32 1e-05, %v1509_v21  ;;  %v4492_v21 = vld [vmem:[%s4959_s7 + $0x8] sm:$0xff] }
 0x69d   :  { %v1514_v54 = vadd.f32 1e-05, %v1511_v25  ;;  %v4509_v25 = vld [vmem:[%s4959_s7 + $0x18] sm:$0xff] }
 0x69e   :  { %3684 = vrsqrt.f32 %v1512_v9  ;;  %v4516_v9 = vld [vmem:[%s4959_s7 + $0x20] sm:$0xff] }
 0x69f   :  { %3686 = vrsqrt.f32 %v1514_v54  ;;  %v4523_v54 = vld [vmem:[%s4959_s7 + $0x28] sm:$0xff] }
 0x6a7   :  { %v3683_v58 = vpop.eup %3682 }
 0x6a8   :  { %v1519_v36 = vmul.f32 %v3683_v58, %v4084_v43  ;;  %v4530_v58 = vld [vmem:[%s4959_s7 + $0x30] sm:$0xff] }
 0x6aa   :  { %1534 = vperm.xlu0 %3656, %v1519_v36   ;;  %v1522_v24 = vmul.f32 %v1519_v36, %v1492_v8  ;;  %v4537_v36 = vld [vmem:[%s4959_s7 + $0x38] sm:$0xff] }
 0x6ab   :  { %v3685_v32 = vpop.eup %3684 }
 0x6ac   :  { %v3687_v29 = vpop.eup %3686  ;;  %v1525_v30 = vsub.f32 %v4097_v53, %v1522_v24  ;;  %v1518_v22 = vmul.f32 %v3685_v32, %v4068_v62  ;;  %v4544_v24 = vld [vmem:[%s4959_s7 + $0x40] sm:$0xff]  ;;  %v4551_v32 = vld [vmem:[%s4959_s7 + $0x48] sm:$0xff] }
 0x6ad   :  { %v1520_v52 = vmul.f32 %v3687_v29, %v4108_v41  ;;  %v4558_v29 = vld [vmem:[%s4959_s7 + $0x50] sm:$0xff] }
 0x6ae   :  { %1552 = vperm.xlu0 %3656, %v1525_v30   ;;  %1529 = vperm.xlu1 %3657, %v1518_v22   ;;  %v1521_v63 = vmul.f32 %v1518_v22, %v1491_v10  ;;  %v4565_v30 = vld [vmem:[%s4959_s7 + $0x58] sm:$0xff]  ;;  %v4572_v22 = vld [vmem:[%s4959_s7 + $0x60] sm:$0xff] }
 0x6af   :  { %v1523_v19 = vmul.f32 %v1520_v52, %v1493_v13  ;;  %v2937_v13 = vld [vmem:[%s4952_s0 + $0x4] sm:$0x3]  ;;  %4996 = vst [vmem:[#allocation7_spill] sm:$0xff] %v4565_v30  ;;  %4997 = vst [vmem:[#allocation8_spill] sm:$0xff] %v4572_v22 }
 0x6b0   :  { %v1524_v43 = vsub.f32 %v4079_v42, %v1521_v63  ;;  %v1571_v15 = vrot.slane %v2937_v13, %v4169_v60  ;;  %v1577_v16 = vrot.slane %v2937_v13, %v4187_v35  ;;  %v4593_v63 = vld [vmem:[%s4959_s7 + $0x78] sm:$0xff] }
 0x6b1   :  { %v1526_v7 = vsub.f32 %v4122_v6, %v1523_v19  ;;  %v4586_v19 = vld [vmem:[%s4959_s7 + $0x70] sm:$0xff]  ;;  %5000 = vst [vmem:[#allocation11_spill] sm:$0xff] %v4593_v63 }
 0x6b2   :  { %1539 = vperm.xlu1 %3657, %v1520_v52   ;;  %v4579_v52 = vld [vmem:[%s4959_s7 + $0x68] sm:$0xff]  ;;  %4999 = vst [vmem:[#allocation10_spill] sm:$0xff] %v4586_v19 }
 0x6b3   :  { %1557 = vperm.xlu0 %3656, %v1526_v7   ;;  %4998 = vst [vmem:[#allocation9_spill] sm:$0xff] %v4579_v52  ;;  %v4602_v7 = vld [vmem:[%s4956_s4] sm:$0xff] }
 0x6b6   :  { %1547 = vperm.xlu1 %3657, %v1524_v43   ;;  %v4611_v43 = vld [vmem:[%s4956_s4 + $0x8] sm:$0xff] }
 0x6e2   :  { %v4474_v20 = vpop.f32.mrf.mxu0 }
 0x6e3   :  { %4995 = vst [vmem:[#allocation6_spill] sm:$0xff] %v4474_v20 }
 0x6e4   :  { %v3433_v18 = vpop.f32.mrf.mxu0 }
 0x6e5   :  { %v4620_v18 = vld [vmem:[%s4956_s4 + $0x10] sm:$0xff] }
 0x725   :  { %v1535_v28 = vpop.permute.xlu0 %1534 }
 0x726   :  { %v1543_v62 = vmul.f32 %v1535_v28, %v4420_v50 }
 0x729   :  { %v1553_v53 = vpop.permute.xlu0 %1552  ;;  %v1530_v8 = vpop.permute.xlu1 %1529 }
 0x72a   :  { %v1561_v41 = vadd.f32 %v1553_v53, %v1543_v62  ;;  %v1542_v6 = vmul.f32 %v1530_v8, %v4413_v39 }
 0x72c   :  { %3688 = vtanh.f32 %v1561_v41 }
 0x72d   :  { %v1540_v26 = vpop.permute.xlu1 %1539 }
 0x72e   :  { %v1544_v2 = vmul.f32 %v1540_v26, %v4429_v14  ;;  %v1558_v10 = vpop.permute.xlu0 %1557 }
 0x730   :  { %v1562_v11 = vadd.f32 %v1558_v10, %v1544_v2 }
 0x731   :  { %v1548_v12 = vpop.permute.xlu1 %1547 }
 0x732   :  { %3690 = vtanh.f32 %v1562_v11  ;;  %v1560_v42 = vadd.f32 %v1548_v12, %v1542_v6 }
 0x734   :  { %3692 = vtanh.f32 %v1560_v42 }
 0x739   :  { %v3689_v50 = vpop.eup %3688 }
 0x73a   :  { %v1572_v14 = vmul.f32 %v3689_v50, %v1571_v15 }
 0x73f   :  { %v3691_v49 = vpop.eup %3690 }
 0x740   :  { %v1578_v37 = vmul.f32 %v3691_v49, %v1577_v16 }
 0x741   :  { %v3693_v5 = vpop.eup %3692 }
 0x742   :  { %v1573_v33 = vadd.f32 %v3693_v5, %v1572_v14 }
 0x744   :  { %v1579_v39 = vadd.f32 %v1578_v37, %v1573_v33 }
 0x746   :  { %v1580_v27 = vmul.f32 0.2, %v1579_v39 }
 0x748   :  { %v4485_v48 = vadd.f32 %v1580_v27, %v4351_v31  ;;  %v4501_v31 = vld [vmem:[%s4959_s7 + $0x10] sm:$0xff] }
 0x74a   :  { %3445 = vmatprep.subr.mxu0 %v4485_v48 }
 0x74b   :  { %3446 = vmatpush3.msra.mxu0 %v4485_v48 }
 0x74c   :  { %3448 = vmatmul.mubr.msk.f32.vlgmr.msra.gmra.mxu0 %vm254_vm3, %v4492_v21  ;;  %3506 = vmatprep.subr.mxu0 %v4986_v23 }
 0x74d   :  { %3507 = vmatpush3.msra.mxu0 %v4485_v48  ;;  %3450 = vmatprep.mubr.msk.f32.mxu0 %vm254_vm3, %v4501_v31 }
 0x74e   :  { %3543 = vmatprep.subr.mxu0 %v4986_v23 }
 0x750   :  { %3451 = vmatmul.mubr.msk.f32.gmra.mxu0 %vm254_vm3, %v4509_v25 }
 0x751   :  { %3453 = vmatprep.mubr.msk.f32.mxu0 %vm254_vm3, %v4516_v9 }
 0x754   :  { %3454 = vmatmul.mubr.msk.f32.gmra.mxu0 %vm254_vm3, %v4523_v54 }
 0x755   :  { %3456 = vmatprep.mubr.msk.f32.mxu0 %vm254_vm3, %v4530_v58 }
 0x758   :  { %3457 = vmatmul.mubr.msk.f32.gmra.mxu0 %vm254_vm3, %v4537_v36 }
 0x759   :  { %3459 = vmatprep.mubr.msk.f32.mxu0 %vm254_vm3, %v4544_v24 }
 0x75c   :  { %3460 = vmatmul.mubr.msk.f32.gmra.mxu0 %vm254_vm3, %v4551_v32 }
 0x75d   :  { %3462 = vmatprep.mubr.msk.f32.mxu0 %vm254_vm3, %v4558_v29 }
 0x760   :  { %3463 = vmatmul.mubr.msk.f32.gmra.mxu0 %vm254_vm3, %v4565_v30 }
 0x761   :  { %3465 = vmatprep.mubr.msk.f32.mxu0 %vm254_vm3, %v4572_v22 }
 0x764   :  { %3466 = vmatmul.mubr.msk.f32.gmra.mxu0 %vm254_vm3, %v4579_v52 }
 0x765   :  { %3468 = vmatprep.mubr.msk.f32.mxu0 %vm254_vm3, %v4586_v19 }
 0x768   :  { %3469 = vmatmul.mubr.msk.f32.gmra.mxu0 %vm254_vm3, %v4593_v63 }
 0x769   :  { %3508 = vmatprep.mubr.msk.f32.mxu0 %vm3767_vm1, %v4986_v23 }
 0x76c   :  { %3509 = vmatmul.mubr.msk.f32.vlgmr.msra.gmra.mxu0 %vm254_vm3, %v4602_v7 }
 0x76d   :  { %3511 = vmatprep.mubr.msk.f32.mxu0 %vm3767_vm1, %v4986_v23 }
 0x770   :  { %3512 = vmatmul.mubr.msk.f32.gmra.mxu0 %vm254_vm3, %v4611_v43 }
 0x771   :  { %3514 = vmatprep.mubr.msk.f32.mxu0 %vm3767_vm1, %v4986_v23 }
 0x774   :  { %3515 = vmatmul.mubr.msk.f32.gmra.mxu0 %vm254_vm3, %v4620_v18 }
 0x775   :  { %3575 = vmatprep.mubr.msk.f32.mxu0 %vm3767_vm1, %v4986_v23 }
 0x80c   :  { %v4626_v28 = vpop.f32.mrf.mxu0 }
 0x80e   :  { %v4628_v53 = vpop.f32.mrf.mxu0 }
 0x810   :  { %v4630_v8 = vpop.f32.mrf.mxu0 }
 0x812   :  { %v4632_v62 = vpop.f32.mrf.mxu0 }
 0x814   :  { %v3455_v41 = vpop.f32.mrf.mxu0 }
 0x816   :  { %v1670_v26 = vpop.f32.mrf.mxu0 }
 0x818   :  { %v3458_v2 = vpop.f32.mrf.mxu0 }
 0x81a   :  { %v1680_v10 = vpop.f32.mrf.mxu0 }
 0x81c   :  { %v3461_v6 = vpop.f32.mrf.mxu0 }
 0x81e   :  { %v1690_v11 = vpop.f32.mrf.mxu0 }
 0x820   :  { %v3464_v12 = vpop.f32.mrf.mxu0 }
 0x822   :  { %v1700_v42 = vpop.f32.mrf.mxu0 }
 0x824   :  { %v3467_v13 = vpop.f32.mrf.mxu0 }
 0x825   :  { %v1716_v14 = vadd.f32 %v3467_v13, %v4070_v1 }
 0x826   :  { %v1710_v15 = vpop.f32.mrf.mxu0 }
 0x827   :  { %v1711_v39 = vadd.f32 %v1710_v15, %v4087_v40  ;;  %v1742_v34 = vmax.f32 %v1716_v14, 0.0  ;;  %v1701_v15 = vadd.f32 %v1700_v42, %v4110_v0  ;;  %v1696_v14 = vadd.f32 %v3461_v6, %v4124_v45 }
 0x828   :  { %v3470_v50 = vpop.f32.mrf.mxu0  ;;  %v1686_v6 = vadd.f32 %v3458_v2, %v4167_v59  ;;  %v1671_v2 = vadd.f32 %v1670_v26, %v4165_v44  ;;  %v1656_v26 = vadd.f32 %v4626_v28, %v4202_v3  ;;  %v4687_v28 = vld [vmem:[%s4961_s9] sm:$0xf] }
 0x829   :  { %v1726_v16 = vadd.f32 %v3470_v50, %v4061_v57  ;;  %v1706_v50 = vadd.f32 %v3464_v12, %v4099_v56  ;;  %v1739_v42 = vmax.f32 %v1701_v15, 0.0  ;;  %v1676_v15 = vadd.f32 %v3455_v41, %v4180_v38 }
 0x82a   :  { %v1720_v49 = vpop.f32.mrf.mxu0  ;;  %v1661_v41 = vadd.f32 %v4632_v62, %v4178_v4 }
 0x82b   :  { %v1744_v5 = vmax.f32 %v1726_v16, 0.0  ;;  %v1721_v33 = vadd.f32 %v1720_v49, %v4059_v55  ;;  %v1741_v16 = vmax.f32 %v1711_v39, 0.0  ;;  %v1740_v12 = vmax.f32 %v1706_v50, 0.0 }
 0x82c   :  { %v4637_v37 = vpop.f32.mrf.mxu0 }
 0x82d   :  { %v1743_v27 = vmax.f32 %v1721_v33, 0.0  ;;  %3472 = vmatpush3.msra.mxu1 %v1744_v5  ;;  %1911 = vadd.xlane.f32.xlu0 %v4637_v37  ;;  %v1920_v39 = vmul.f32 %v4637_v37, %v4637_v37 }
 0x82e   :  { %3473 = vmatprep.subr.mxu1 %v4986_v23  ;;  %v3510_v20 = vpop.f32.mrf.mxu0 }
 0x82f   :  { %3474 = vmatpush3.msra.mxu1 %v1743_v27  ;;  %v1738_v27 = vmax.f32 %v1696_v14, 0.0  ;;  %v1734_v14 = vmax.f32 %v1676_v15, 0.0 }
 0x830   :  { %3475 = vmatprep.subr.mxu1 %v4986_v23  ;;  %v4644_v13 = vpop.f32.mrf.mxu0 }
 0x831   :  { %1913 = vadd.xlane.f32.xlu1 %v4644_v13  ;;  %3476 = vmatpush3.msra.mxu1 %v1742_v34  ;;  %v1921_v20 = vmul.f32 %v4644_v13, %v4644_v13  ;;  %v1691_v34 = vadd.f32 %v1690_v11, %v4157_v46  ;;  %v1681_v11 = vadd.f32 %v1680_v10, %v4162_v61 }
 0x832   :  { %3477 = vmatprep.subr.mxu1 %v4986_v23  ;;  %v3513_v49 = vpop.f32.mrf.mxu0  ;;  %v1666_v10 = vadd.f32 %v4630_v8, %v4191_v51  ;;  %v1651_v8 = vadd.f32 %v4628_v53, %v4198_v47 }
 0x833   :  { %3478 = vmatpush3.msra.mxu1 %v1741_v16  ;;  %v1737_v16 = vmax.f32 %v1691_v34, 0.0  ;;  %v1736_v49 = vmax.f32 %v1686_v6, 0.0 }
 0x834   :  { %3479 = vmatprep.subr.mxu1 %v4986_v23  ;;  %v4653_v5 = vpop.f32.mrf.mxu0  ;;  %v1732_v34 = vmax.f32 %v1666_v10, 0.0  ;;  %v1729_v62 = vmax.f32 %v1651_v8, 0.0 }
 0x835   :  { %1925 = vadd.xlane.f32.xlu1 %v1921_v20  ;;  %1915 = vadd.xlane.f32.xlu0 %v4653_v5  ;;  %v1922_v50 = vmul.f32 %v4653_v5, %v4653_v5  ;;  %v1735_v20 = vmax.f32 %v1681_v11, 0.0 }
 0x836   :  { %3480 = vmatpush3.msra.mxu1 %v1740_v12  ;;  %v3516_v33 = vpop.f32.mrf.mxu0  ;;  %v1733_v12 = vmax.f32 %v1671_v2, 0.0 }
 0x837   :  { %3481 = vmatprep.subr.mxu1 %v4986_v23  ;;  %v1730_v33 = vmax.f32 %v1656_v26, 0.0 }
 0x838   :  { %3482 = vmatpush3.msra.mxu1 %v1739_v42  ;;  %v1731_v42 = vmax.f32 %v1661_v41, 0.0 }
 0x839   :  { %3483 = vmatprep.subr.mxu1 %v4986_v23  ;;  %1923 = vadd.xlane.f32.xlu0 %v1920_v39 }
 0x83a   :  { %1927 = vadd.xlane.f32.xlu1 %v1922_v50  ;;  %3484 = vmatpush3.msra.mxu1 %v1738_v27 }
 0x83b   :  { %3485 = vmatprep.subr.mxu1 %v4986_v23 }
 0x83c   :  { %3486 = vmatpush3.msra.mxu1 %v1737_v16 }
 0x83d   :  { %3487 = vmatprep.subr.mxu1 %v4986_v23 }
 0x83e   :  { %3488 = vmatpush3.msra.mxu1 %v1736_v49 }
 0x83f   :  { %3489 = vmatprep.subr.mxu1 %v4986_v23 }
 0x840   :  { %3490 = vmatpush3.msra.mxu1 %v1735_v20 }
 0x841   :  { %3491 = vmatprep.subr.mxu1 %v4986_v23 }
 0x842   :  { %3492 = vmatpush3.msra.mxu1 %v1734_v14 }
 0x843   :  { %3493 = vmatprep.subr.mxu1 %v4986_v23 }
 0x844   :  { %3494 = vmatpush3.msra.mxu1 %v1733_v12 }
 0x845   :  { %3495 = vmatprep.subr.mxu1 %v4986_v23 }
 0x846   :  { %3496 = vmatpush3.msra.mxu1 %v1732_v34 }
 0x847   :  { %3497 = vmatprep.subr.mxu1 %v4986_v23 }
 0x848   :  { %3498 = vmatpush3.msra.mxu1 %v1731_v42 }
 0x849   :  { %3499 = vmatprep.subr.mxu1 %v4986_v23 }
 0x84a   :  { %3500 = vmatpush3.msra.mxu1 %v1730_v33 }
 0x84b   :  { %3501 = vmatprep.subr.mxu1 %v4986_v23 }
 0x84c   :  { %3502 = vmatpush3.msra.mxu1 %v1729_v62 }
 0x84d   :  { %3504 = vmatmul.mubr.f32.vlgmr.msra.gmra.mxu1 %v4687_v28 }
 0x84e   :  { %3519 = vmatprep.mubr.msk.f32.mxu1 %vm254_vm3, %v4464_v17 }
 0x8b6   :  { %v1912_v53 = vpop.xlane.xlu0 %1911 }
 0x8b7   :  { %v1917_v11 = vmul.f32 0.0078125, %v1912_v53  ;;  %v4695_v53 = vld [vmem:[%s4957_s5 + $0x8] sm:$0xff] }
 0x8b9   :  { %v1932_v10 = vmul.f32 %v1917_v11, %v1917_v11 }
 0x8ba   :  { %v1914_v39 = vpop.xlane.xlu1 %1913 }
 0x8bb   :  { %v1918_v6 = vmul.f32 0.0078125, %v1914_v39 }
 0x8bd   :  { %v1933_v16 = vmul.f32 %v1918_v6, %v1918_v6 }
 0x8be   :  { %v1926_v27 = vpop.xlane.xlu1 %1925  ;;  %v1916_v50 = vpop.xlane.xlu0 %1915 }
 0x8bf   :  { %v1930_v15 = vmul.f32 0.0078125, %v1926_v27  ;;  %v1919_v49 = vmul.f32 0.0078125, %v1916_v50 }
 0x8c1   :  { %v1936_v2 = vsub.f32 %v1930_v15, %v1933_v16  ;;  %v1934_v26 = vmul.f32 %v1919_v49, %v1919_v49 }
 0x8c2   :  { %v1924_v20 = vpop.xlane.xlu0 %1923 }
 0x8c3   :  { %v1939_v14 = vadd.f32 1e-05, %v1936_v2  ;;  %v1929_v41 = vmul.f32 0.0078125, %v1924_v20  ;;  %v1928_v12 = vpop.xlane.xlu1 %1927  ;;  %v4701_v2 = vld [vmem:[%s4958_s6 + $0x8] sm:$0xff] }
 0x8c4   :  { %v1931_v34 = vmul.f32 0.0078125, %v1928_v12 }
 0x8c5   :  { %3694 = vrsqrt.f32 %v1939_v14  ;;  %v1935_v8 = vsub.f32 %v1929_v41, %v1932_v10  ;;  %v4707_v10 = vld [vmem:[%s4957_s5] sm:$0xff] }
 0x8c6   :  { %v1937_v42 = vsub.f32 %v1931_v34, %v1934_v26  ;;  %v4719_v34 = vld [vmem:[%s4958_s6 + $0x10] sm:$0xff] }
 0x8c7   :  { %v1938_v33 = vadd.f32 1e-05, %v1935_v8 }
 0x8c8   :  { %v1940_v62 = vadd.f32 1e-05, %v1937_v42  ;;  %v4725_v42 = vld [vmem:[%s4958_s6] sm:$0xff] }
 0x8c9   :  { %3696 = vrsqrt.f32 %v1938_v33 }
 0x8ca   :  { %3698 = vrsqrt.f32 %v1940_v62 }
 0x8d2   :  { %v3695_v39 = vpop.eup %3694 }
 0x8d3   :  { %v1945_v27 = vmul.f32 %v4695_v53, %v3695_v39 }
 0x8d5   :  { %1960 = vperm.xlu0 %3656, %v1945_v27   ;;  %v1948_v50 = vmul.f32 %v1945_v27, %v1918_v6  ;;  %v4713_v6 = vld [vmem:[%s4957_s5 + $0x10] sm:$0xff] }
 0x8d6   :  { %v3697_v16 = vpop.eup %3696 }
 0x8d7   :  { %v3699_v15 = vpop.eup %3698  ;;  %v1951_v20 = vsub.f32 %v4701_v2, %v1948_v50  ;;  %v1944_v14 = vmul.f32 %v4707_v10, %v3697_v16 }
 0x8d8   :  { %v1946_v41 = vmul.f32 %v4713_v6, %v3699_v15 }
 0x8d9   :  { %1978 = vperm.xlu0 %3656, %v1951_v20   ;;  %1955 = vperm.xlu1 %3657, %v1944_v14   ;;  %v1947_v26 = vmul.f32 %v1944_v14, %v1917_v11 }
 0x8da   :  { %v1949_v12 = vmul.f32 %v1946_v41, %v1919_v49 }
 0x8db   :  { %v1950_v33 = vsub.f32 %v4725_v42, %v1947_v26 }
 0x8dc   :  { %v1952_v8 = vsub.f32 %v4719_v34, %v1949_v12 }
 0x8dd   :  { %1965 = vperm.xlu1 %3657, %v1946_v41  }
 0x8de   :  { %1983 = vperm.xlu0 %3656, %v1952_v8  }
 0x8e1   :  { %1973 = vperm.xlu1 %3657, %v1950_v33   ;;  %v2957_v33 = vld [vmem:[%s4952_s0 + $0x6] sm:$0x3] }
 0x90d   :  { %v4728_v62 = vpop.f32.mrf.mxu1 }
 0x90f   :  { %v3505_v11 = vpop.f32.mrf.mxu1 }
 0x910   :  { %v1997_v11 = vrot.slane %v2957_v33, %v4169_v60 }
 0x950   :  { %v1961_v49 = vpop.permute.xlu0 %1960 }
 0x951   :  { %v1969_v50 = vmul.f32 %v1961_v49, %v4644_v13  ;;  %v2003_v49 = vrot.slane %v2957_v33, %v4187_v35 }
 0x954   :  { %v1979_v39 = vpop.permute.xlu0 %1978  ;;  %v1956_v27 = vpop.permute.xlu1 %1955 }
 0x955   :  { %v1987_v16 = vadd.f32 %v1979_v39, %v1969_v50  ;;  %v1968_v41 = vmul.f32 %v1956_v27, %v4637_v37 }
 0x957   :  { %3700 = vtanh.f32 %v1987_v16 }
 0x958   :  { %v1966_v15 = vpop.permute.xlu1 %1965 }
 0x959   :  { %v1970_v20 = vmul.f32 %v1966_v15, %v4653_v5  ;;  %v1984_v14 = vpop.permute.xlu0 %1983 }
 0x95b   :  { %v1988_v12 = vadd.f32 %v1984_v14, %v1970_v20 }
 0x95c   :  { %v1974_v8 = vpop.permute.xlu1 %1973 }
 0x95d   :  { %3702 = vtanh.f32 %v1988_v12  ;;  %v1986_v26 = vadd.f32 %v1974_v8, %v1968_v41 }
 0x95f   :  { %3704 = vtanh.f32 %v1986_v26 }
 0x964   :  { %v3701_v13 = vpop.eup %3700 }
 0x965   :  { %v1998_v5 = vmul.f32 %v3701_v13, %v1997_v11 }
 0x96a   :  { %v3703_v39 = vpop.eup %3702 }
 0x96b   :  { %v2004_v15 = vmul.f32 %v3703_v39, %v2003_v49 }
 0x96c   :  { %v3705_v50 = vpop.eup %3704 }
 0x96d   :  { %v1999_v16 = vadd.f32 %v3705_v50, %v1998_v5 }
 0x96f   :  { %v2005_v37 = vadd.f32 %v2004_v15, %v1999_v16 }
 0x971   :  { %v2006_v27 = vmul.f32 0.2, %v2005_v37 }
 0x973   :  { %v4739_v20 = vadd.f32 %v2006_v27, %v4485_v48 }
 0x975   :  { %3517 = vmatprep.subr.mxu1 %v4739_v20 }
 0x976   :  { %3518 = vmatpush3.msra.mxu1 %v4739_v20 }
 0x977   :  { %3520 = vmatmul.mubr.msk.f32.vlgmr.msra.gmra.mxu1 %vm254_vm3, %v4492_v21  ;;  %3578 = vmatprep.subr.mxu1 %v4986_v23 }
 0x978   :  { %3579 = vmatpush3.msra.mxu1 %v4739_v20  ;;  %3522 = vmatprep.mubr.msk.f32.mxu1 %vm254_vm3, %v4501_v31 }
 0x979   :  { %3615 = vmatprep.subr.mxu1 %v4986_v23 }
 0x97b   :  { %3523 = vmatmul.mubr.msk.f32.gmra.mxu1 %vm254_vm3, %v4509_v25 }
 0x97c   :  { %3525 = vmatprep.mubr.msk.f32.mxu1 %vm254_vm3, %v4516_v9 }
 0x97f   :  { %3526 = vmatmul.mubr.msk.f32.gmra.mxu1 %vm254_vm3, %v4523_v54 }
 0x980   :  { %3528 = vmatprep.mubr.msk.f32.mxu1 %vm254_vm3, %v4530_v58 }
 0x983   :  { %3529 = vmatmul.mubr.msk.f32.gmra.mxu1 %vm254_vm3, %v4537_v36 }
 0x984   :  { %3531 = vmatprep.mubr.msk.f32.mxu1 %vm254_vm3, %v4544_v24 }
 0x987   :  { %3532 = vmatmul.mubr.msk.f32.gmra.mxu1 %vm254_vm3, %v4551_v32 }
 0x988   :  { %3534 = vmatprep.mubr.msk.f32.mxu1 %vm254_vm3, %v4558_v29 }
 0x98b   :  { %3535 = vmatmul.mubr.msk.f32.gmra.mxu1 %vm254_vm3, %v4565_v30 }
 0x98c   :  { %3537 = vmatprep.mubr.msk.f32.mxu1 %vm254_vm3, %v4572_v22 }
 0x98f   :  { %3538 = vmatmul.mubr.msk.f32.gmra.mxu1 %vm254_vm3, %v4579_v52 }
 0x990   :  { %3540 = vmatprep.mubr.msk.f32.mxu1 %vm254_vm3, %v4586_v19 }
 0x993   :  { %3541 = vmatmul.mubr.msk.f32.gmra.mxu1 %vm254_vm3, %v4593_v63 }
 0x994   :  { %3580 = vmatprep.mubr.msk.f32.mxu1 %vm3767_vm1, %v4986_v23 }
 0x997   :  { %3581 = vmatmul.mubr.msk.f32.vlgmr.msra.gmra.mxu1 %vm254_vm3, %v4602_v7 }
 0x998   :  { %3583 = vmatprep.mubr.msk.f32.mxu1 %vm3767_vm1, %v4986_v23 }
 0x99b   :  { %3584 = vmatmul.mubr.msk.f32.gmra.mxu1 %vm254_vm3, %v4611_v43 }
 0x99c   :  { %3586 = vmatprep.mubr.msk.f32.mxu1 %vm3767_vm1, %v4986_v23 }
 0x99f   :  { %3587 = vmatmul.mubr.msk.f32.gmra.mxu1 %vm254_vm3, %v4620_v18 }
 0x9a0   :  { %3647 = vmatprep.mubr.msk.f32.mxu1 %vm3767_vm1, %v4986_v23 }
 0xa37   :  { %v4790_v48 = vpop.f32.mrf.mxu1 }
 0xa39   :  { %v4792_v14 = vpop.f32.mrf.mxu1 }
 0xa3b   :  { %v4794_v7 = vpop.f32.mrf.mxu1 }
 0xa3d   :  { %v4796_v41 = vpop.f32.mrf.mxu1 }
 0xa3f   :  { %v3527_v12 = vpop.f32.mrf.mxu1 }
 0xa41   :  { %v2096_v8 = vpop.f32.mrf.mxu1 }
 0xa43   :  { %v3530_v43 = vpop.f32.mrf.mxu1 }
 0xa45   :  { %v2106_v26 = vpop.f32.mrf.mxu1 }
 0xa47   :  { %v3533_v33 = vpop.f32.mrf.mxu1 }
 0xa49   :  { %v2116_v11 = vpop.f32.mrf.mxu1 }
 0xa4b   :  { %v3536_v13 = vpop.f32.mrf.mxu1 }
 0xa4d   :  { %v2126_v49 = vpop.f32.mrf.mxu1 }
 0xa4f   :  { %v3539_v18 = vpop.f32.mrf.mxu1 }
 0xa50   :  { %v2142_v15 = vadd.f32 %v3539_v18, %v4070_v1 }
 0xa51   :  { %v2136_v39 = vpop.f32.mrf.mxu1 }
 0xa52   :  { %v2137_v19 = vadd.f32 %v2136_v39, %v4087_v40  ;;  %v2168_v30 = vmax.f32 %v2142_v15, 0.0  ;;  %v2127_v39 = vadd.f32 %v2126_v49, %v4110_v0 }
 0xa53   :  { %v3542_v5 = vpop.f32.mrf.mxu1 }
 0xa54   :  { %v2152_v50 = vadd.f32 %v3542_v5, %v4061_v57  ;;  %v2132_v5 = vadd.f32 %v3536_v13, %v4099_v56 }
 0xa55   :  { %v2146_v16 = vpop.f32.mrf.mxu1 }
 0xa56   :  { %v2170_v37 = vmax.f32 %v2152_v50, 0.0  ;;  %v2147_v27 = vadd.f32 %v2146_v16, %v4059_v55  ;;  %v2167_v50 = vmax.f32 %v2137_v19, 0.0  ;;  %v2166_v13 = vmax.f32 %v2132_v5, 0.0 }
 0xa57   :  { %v4801_v63 = vpop.f32.mrf.mxu1  ;;  %v2165_v19 = vmax.f32 %v2127_v39, 0.0  ;;  %v2102_v39 = vadd.f32 %v3527_v12, %v4180_v38  ;;  %v2087_v12 = vadd.f32 %v4796_v41, %v4178_v4 }
 0xa58   :  { %v2169_v52 = vmax.f32 %v2147_v27, 0.0  ;;  %3544 = vmatpush3.msra.mxu0 %v2170_v37  ;;  %2337 = vadd.xlane.f32.xlu0 %v4801_v63  ;;  %v2346_v37 = vmul.f32 %v4801_v63, %v4801_v63 }
 0xa59   :  { %3545 = vmatprep.subr.mxu0 %v4986_v23  ;;  %v3582_v22 = vpop.f32.mrf.mxu1 }
 0xa5a   :  { %3546 = vmatpush3.msra.mxu0 %v2169_v52  ;;  %v2122_v52 = vadd.f32 %v3533_v33, %v4124_v45  ;;  %v2112_v33 = vadd.f32 %v3530_v43, %v4167_v59  ;;  %v2097_v43 = vadd.f32 %v2096_v8, %v4165_v44  ;;  %v2082_v8 = vadd.f32 %v4790_v48, %v4202_v3 }
 0xa5b   :  { %3547 = vmatprep.subr.mxu0 %v4986_v23  ;;  %v4808_v18 = vpop.f32.mrf.mxu1 }
 0xa5c   :  { %2339 = vadd.xlane.f32.xlu1 %v4808_v18  ;;  %3548 = vmatpush3.msra.mxu0 %v2168_v30  ;;  %v2347_v22 = vmul.f32 %v4808_v18, %v4808_v18  ;;  %v2117_v30 = vadd.f32 %v2116_v11, %v4157_v46  ;;  %v2164_v27 = vmax.f32 %v2122_v52, 0.0  ;;  %v2107_v11 = vadd.f32 %v2106_v26, %v4162_v61 }
 0xa5d   :  { %3549 = vmatprep.subr.mxu0 %v4986_v23  ;;  %v3585_v16 = vpop.f32.mrf.mxu1  ;;  %v2092_v26 = vadd.f32 %v4794_v7, %v4191_v51  ;;  %v2160_v52 = vmax.f32 %v2102_v39, 0.0  ;;  %v2077_v7 = vadd.f32 %v4792_v14, %v4198_v47 }
 0xa5e   :  { %3550 = vmatpush3.msra.mxu0 %v2167_v50  ;;  %v2163_v50 = vmax.f32 %v2117_v30, 0.0  ;;  %v2162_v16 = vmax.f32 %v2112_v33, 0.0 }
 0xa5f   :  { %3551 = vmatprep.subr.mxu0 %v4986_v23  ;;  %v4817_v15 = vpop.f32.mrf.mxu1  ;;  %v2158_v30 = vmax.f32 %v2092_v26, 0.0  ;;  %v2155_v41 = vmax.f32 %v2077_v7, 0.0 }
 0xa60   :  { %2351 = vadd.xlane.f32.xlu1 %v2347_v22  ;;  %2341 = vadd.xlane.f32.xlu0 %v4817_v15  ;;  %v2348_v5 = vmul.f32 %v4817_v15, %v4817_v15  ;;  %v2161_v22 = vmax.f32 %v2107_v11, 0.0 }
 0xa61   :  { %3552 = vmatpush3.msra.mxu0 %v2166_v13  ;;  %v3588_v49 = vpop.f32.mrf.mxu1  ;;  %v2159_v13 = vmax.f32 %v2097_v43, 0.0 }
 0xa62   :  { %3553 = vmatprep.subr.mxu0 %v4986_v23  ;;  %v2156_v49 = vmax.f32 %v2082_v8, 0.0 }
 0xa63   :  { %3554 = vmatpush3.msra.mxu0 %v2165_v19  ;;  %v2157_v19 = vmax.f32 %v2087_v12, 0.0 }
 0xa64   :  { %3555 = vmatprep.subr.mxu0 %v4986_v23  ;;  %2349 = vadd.xlane.f32.xlu0 %v2346_v37 }
 0xa65   :  { %2353 = vadd.xlane.f32.xlu1 %v2348_v5  ;;  %3556 = vmatpush3.msra.mxu0 %v2164_v27 }
 0xa66   :  { %3557 = vmatprep.subr.mxu0 %v4986_v23 }
 0xa67   :  { %3558 = vmatpush3.msra.mxu0 %v2163_v50 }
 0xa68   :  { %3559 = vmatprep.subr.mxu0 %v4986_v23 }
 0xa69   :  { %3560 = vmatpush3.msra.mxu0 %v2162_v16 }
 0xa6a   :  { %3561 = vmatprep.subr.mxu0 %v4986_v23 }
 0xa6b   :  { %3562 = vmatpush3.msra.mxu0 %v2161_v22 }
 0xa6c   :  { %3563 = vmatprep.subr.mxu0 %v4986_v23 }
 0xa6d   :  { %3564 = vmatpush3.msra.mxu0 %v2160_v52 }
 0xa6e   :  { %3565 = vmatprep.subr.mxu0 %v4986_v23 }
 0xa6f   :  { %3566 = vmatpush3.msra.mxu0 %v2159_v13 }
 0xa70   :  { %3567 = vmatprep.subr.mxu0 %v4986_v23 }
 0xa71   :  { %3568 = vmatpush3.msra.mxu0 %v2158_v30 }
 0xa72   :  { %3569 = vmatprep.subr.mxu0 %v4986_v23 }
 0xa73   :  { %3570 = vmatpush3.msra.mxu0 %v2157_v19 }
 0xa74   :  { %3571 = vmatprep.subr.mxu0 %v4986_v23 }
 0xa75   :  { %3572 = vmatpush3.msra.mxu0 %v2156_v49 }
 0xa76   :  { %3573 = vmatprep.subr.mxu0 %v4986_v23 }
 0xa77   :  { %3574 = vmatpush3.msra.mxu0 %v2155_v41 }
 0xa78   :  { %3576 = vmatmul.mubr.f32.vlgmr.msra.gmra.mxu0 %v4687_v28 }
 0xa79   :  { %3591 = vmatprep.mubr.msk.f32.mxu0 %vm254_vm3, %v4464_v17 }
 0xae1   :  { %v2338_v48 = vpop.xlane.xlu0 %2337 }
 0xae2   :  { %v2343_v5 = vmul.f32 0.0078125, %v2338_v48 }
 0xae4   :  { %v2358_v22 = vmul.f32 %v2343_v5, %v2343_v5 }
 0xae5   :  { %v2340_v14 = vpop.xlane.xlu1 %2339 }
 0xae6   :  { %v2344_v37 = vmul.f32 0.0078125, %v2340_v14 }
 0xae8   :  { %v2359_v11 = vmul.f32 %v2344_v37, %v2344_v37 }
 0xae9   :  { %v2352_v33 = vpop.xlane.xlu1 %2351  ;;  %v2342_v27 = vpop.xlane.xlu0 %2341 }
 0xaea   :  { %v2356_v50 = vmul.f32 0.0078125, %v2352_v33  ;;  %v2345_v39 = vmul.f32 0.0078125, %v2342_v27 }
 0xaec   :  { %v2362_v16 = vsub.f32 %v2356_v50, %v2359_v11  ;;  %v2360_v13 = vmul.f32 %v2345_v39, %v2345_v39 }
 0xaed   :  { %v2350_v43 = vpop.xlane.xlu0 %2349 }
 0xaee   :  { %v2365_v26 = vadd.f32 1e-05, %v2362_v16  ;;  %v2355_v52 = vmul.f32 0.0078125, %v2350_v43  ;;  %v2354_v12 = vpop.xlane.xlu1 %2353 }
 0xaef   :  { %v2357_v8 = vmul.f32 0.0078125, %v2354_v12 }
 0xaf0   :  { %3706 = vrsqrt.f32 %v2365_v26  ;;  %v2361_v30 = vsub.f32 %v2355_v52, %v2358_v22 }
 0xaf1   :  { %v2363_v17 = vsub.f32 %v2357_v8, %v2360_v13 }
 0xaf2   :  { %v2364_v7 = vadd.f32 1e-05, %v2361_v30 }
 0xaf3   :  { %v2366_v19 = vadd.f32 1e-05, %v2363_v17 }
 0xaf4   :  { %3708 = vrsqrt.f32 %v2364_v7 }
 0xaf5   :  { %3710 = vrsqrt.f32 %v2366_v19  ;;  %v5001_v19 = vld [vmem:[#allocation13_spill] sm:$0xff] }
 0xafd   :  { %v3707_v49 = vpop.eup %3706 }
 0xafe   :  { %v2371_v41 = vmul.f32 %v4695_v53, %v3707_v49 }
 0xb00   :  { %2386 = vperm.xlu0 %3656, %v2371_v41   ;;  %v2374_v48 = vmul.f32 %v2371_v41, %v2344_v37  ;;  %v172_v37 = vld [vmem:[%s4962_s10] sm:$0xf] }
 0xb01   :  { %v3709_v14 = vpop.eup %3708 }
 0xb02   :  { %v3711_v33 = vpop.eup %3710  ;;  %v2377_v27 = vsub.f32 %v4701_v2, %v2374_v48  ;;  %v2370_v11 = vmul.f32 %v4707_v10, %v3709_v14  ;;  %v5003_v48 = vld [vmem:[#allocation6_spill] sm:$0xff] }
 0xb03   :  { %v2372_v50 = vmul.f32 %v4713_v6, %v3711_v33  ;;  %v2977_v33 = vld [vmem:[%s4952_s0 + $0x8] sm:$0x3]  ;;  %s3769_s0 = smov [#allocation3]  }
 0xb04   :  { %2404 = vperm.xlu0 %3656, %v2377_v27   ;;  %2381 = vperm.xlu1 %3657, %v2370_v11   ;;  %v2373_v43 = vmul.f32 %v2370_v11, %v2343_v5  ;;  %v2423_v27 = vrot.slane %v2977_v33, %v4169_v60  ;;  %v5004_v60 = vld [vmem:[#allocation7_spill] sm:$0xff]  ;;  %s2866_s27 = sshll.u32 %s3769_s0, 4  ;;  %s2867_s27 = int_to_ptr.vmem [resolvable:$true] %s2866_s27 }
 0xb05   :  { %v2375_v16 = vmul.f32 %v2372_v50, %v2345_v39  ;;  %s3744_s28 = scalar_lea.vmem %s2867_s27, 384  ;;  %p3749_p1 = scmp.lt.s32.totalorder %s2867_s27, %s2867_s27 }
 0xb06   :  { %v2376_v53 = vsub.f32 %v4725_v42, %v2373_v43  ;;  %p3745_p0 = scmp.ne.s32.totalorder %s2867_s27, %s3744_s28  ;;  %p3750_p2 = scmp.lt.s32.totalorder %s3744_s28, %s3744_s28 }
 0xb07   :  { %v2378_v22 = vsub.f32 %v4719_v34, %v2375_v16 }
 0xb08   :  { %2391 = vperm.xlu1 %3657, %v2372_v50   ;;  %v2429_v50 = vrot.slane %v2977_v33, %v4187_v35  ;;  %v5005_v35 = vld [vmem:[#allocation8_spill] sm:$0xff]  ;;  %p3751_p3 = por %p3750_p2, %p3749_p1 }
 0xb09   :  { %2409 = vperm.xlu0 %3656, %v2378_v22  }
 0xb0a   :  { %p3752_p4 = pnand %p3751_p3, %p3745_p0 }
 0xb0c   :  { %2399 = vperm.xlu1 %3657, %v2376_v53  }
 0xb10   :  { %466 = vperm.xlu1 %3657, %v172_v37  }
 0xb38   :  { %v2237_v2 = vpop.f32.mrf.mxu0 }
 0xb3a   :  { %v3577_v10 = vpop.f32.mrf.mxu0 }
 0xb7b   :  { %v2387_v26 = vpop.permute.xlu0 %2386 }
 0xb7c   :  { %v2395_v39 = vmul.f32 %v2387_v26, %v4808_v18  ;;  %v5002_v18 = vld [vmem:[#allocation14_spill] sm:$0xff] }
 0xb7f   :  { %v2405_v6 = vpop.permute.xlu0 %2404  ;;  %v2382_v52 = vpop.permute.xlu1 %2381 }
 0xb80   :  { %v2413_v5 = vadd.f32 %v2405_v6, %v2395_v39  ;;  %v2394_v42 = vmul.f32 %v2382_v52, %v4801_v63 }
 0xb82   :  { %3712 = vtanh.f32 %v2413_v5 }
 0xb83   :  { %v2392_v12 = vpop.permute.xlu1 %2391 }
 0xb84   :  { %v2396_v34 = vmul.f32 %v2392_v12, %v4817_v15  ;;  %v2410_v13 = vpop.permute.xlu0 %2409 }
 0xb86   :  { %v2414_v8 = vadd.f32 %v2410_v13, %v2396_v34 }
 0xb87   :  { %v2400_v30 = vpop.permute.xlu1 %2399 }
 0xb88   :  { %3714 = vtanh.f32 %v2414_v8  ;;  %v2412_v17 = vadd.f32 %v2400_v30, %v2394_v42 }
 0xb8a   :  { %3716 = vtanh.f32 %v2412_v17 }
 0xb8b   :  { %v4863_v7 = vpop.permute.xlu1 %466 }
 0xb8c   :  { %v536_v49 = vadd.f32 %v5001_v19, %v4863_v7  ;;  %v960_v41 = vadd.f32 %v5002_v18, %v4863_v7  ;;  %v1386_v15 = vadd.f32 %v5003_v48, %v4863_v7  ;;  %v1812_v14 = vadd.f32 %v4728_v62, %v4863_v7 }
 0xb8d   :  { %v2238_v63 = vadd.f32 %v2237_v2, %v4863_v7 }
 0xb8e   :  { %539 = vst [vmem:[#allocation3] sm:$0xf] %v536_v49  ;;  %964 = vst [vmem:[#allocation3 + $0x4] sm:$0xf] %v960_v41 }
 0xb8f   :  { %1390 = vst [vmem:[#allocation3 + $0x8] sm:$0xf] %v1386_v15  ;;  %1816 = vst [vmem:[#allocation3 + $0xc] sm:$0xf] %v1812_v14  ;;  %v3713_v11 = vpop.eup %3712 }
 0xb90   :  { %2242 = vst [vmem:[#allocation3 + $0x10] sm:$0xf] %v2238_v63  ;;  %v2424_v43 = vmul.f32 %v3713_v11, %v2423_v27 }
 0xb95   :  { %v3715_v16 = vpop.eup %3714 }
 0xb96   :  { %v2430_v53 = vmul.f32 %v3715_v16, %v2429_v50 }
 0xb97   :  { %v3717_v22 = vpop.eup %3716 }
 0xb98   :  { %v2425_v62 = vadd.f32 %v3717_v22, %v2424_v43 }
 0xb9a   :  { %v2431_v37 = vadd.f32 %v2430_v53, %v2425_v62 }
 0xb9c   :  { %v2432_v2 = vmul.f32 0.2, %v2431_v37 }
 0xb9e   :  { %v2433_v10 = vadd.f32 %v2432_v2, %v4739_v20 }
 0xba0   :  { %3589 = vmatprep.subr.mxu0 %v2433_v10 }
 0xba1   :  { %3590 = vmatpush3.msra.mxu0 %v2433_v10 }
 0xba2   :  { %3592 = vmatmul.mubr.msk.f32.vlgmr.msra.gmra.mxu0 %vm254_vm3, %v4492_v21  ;;  %v5006_v21 = vld [vmem:[#allocation9_spill] sm:$0xff] }
 0xba3   :  { %3594 = vmatprep.mubr.msk.f32.mxu0 %vm254_vm3, %v4501_v31  ;;  %v5007_v31 = vld [vmem:[#allocation10_spill] sm:$0xff] }
 0xba6   :  { %3595 = vmatmul.mubr.msk.f32.gmra.mxu0 %vm254_vm3, %v4509_v25  ;;  %v5008_v25 = vld [vmem:[#allocation11_spill] sm:$0xff] }
 0xba7   :  { %3597 = vmatprep.mubr.msk.f32.mxu0 %vm254_vm3, %v4516_v9 }
 0xbaa   :  { %3598 = vmatmul.mubr.msk.f32.gmra.mxu0 %vm254_vm3, %v4523_v54 }
 0xbab   :  { %3600 = vmatprep.mubr.msk.f32.mxu0 %vm254_vm3, %v4530_v58 }
 0xbae   :  { %3601 = vmatmul.mubr.msk.f32.gmra.mxu0 %vm254_vm3, %v4537_v36 }
 0xbaf   :  { %3603 = vmatprep.mubr.msk.f32.mxu0 %vm254_vm3, %v4544_v24 }
 0xbb2   :  { %3604 = vmatmul.mubr.msk.f32.gmra.mxu0 %vm254_vm3, %v4551_v32 }
 0xbb3   :  { %3606 = vmatprep.mubr.msk.f32.mxu0 %vm254_vm3, %v4558_v29 }
 0xbb6   :  { %3607 = vmatmul.mubr.msk.f32.gmra.mxu0 %vm254_vm3, %v5004_v60 }
 0xbb7   :  { %3609 = vmatprep.mubr.msk.f32.mxu0 %vm254_vm3, %v5005_v35 }
 0xbba   :  { %3610 = vmatmul.mubr.msk.f32.gmra.mxu0 %vm254_vm3, %v5006_v21 }
 0xbbb   :  { %3612 = vmatprep.mubr.msk.f32.mxu0 %vm254_vm3, %v5007_v31 }
 0xbbe   :  { %3613 = vmatmul.mubr.msk.f32.gmra.mxu0 %vm254_vm3, %v5008_v25 }
 0xc62   :  { %v4910_v9 = vpop.f32.mrf.mxu0 }
 0xc64   :  { %v4912_v54 = vpop.f32.mrf.mxu0 }
 0xc66   :  { %v3596_v58 = vpop.f32.mrf.mxu0 }
 0xc68   :  { %v2512_v36 = vpop.f32.mrf.mxu0 }
 0xc6a   :  { %v3599_v24 = vpop.f32.mrf.mxu0 }
 0xc6c   :  { %v2522_v32 = vpop.f32.mrf.mxu0 }
 0xc6e   :  { %v3602_v29 = vpop.f32.mrf.mxu0 }
 0xc70   :  { %v2532_v20 = vpop.f32.mrf.mxu0 }
 0xc72   :  { %v3605_v26 = vpop.f32.mrf.mxu0 }
 0xc74   :  { %v2542_v6 = vpop.f32.mrf.mxu0 }
 0xc76   :  { %v3608_v52 = vpop.f32.mrf.mxu0 }
 0xc77   :  { %v2558_v18 = vadd.f32 %v3608_v52, %v4099_v56  ;;  %v2538_v56 = vadd.f32 %v3602_v29, %v4167_v59  ;;  %v2518_v59 = vadd.f32 %v3596_v58, %v4191_v51  ;;  %v2503_v51 = vadd.f32 %v4912_v54, %v4198_v47 }
 0xc78   :  { %v2552_v39 = vpop.f32.mrf.mxu0 }
 0xc79   :  { %v2588_v33 = vmax.f32 %v2538_v56, 0.0 }
 0xc7a   :  { %v3611_v5 = vpop.f32.mrf.mxu0 }
 0xc7b   :  { %v2568_v8 = vadd.f32 %v3611_v5, %v4070_v1  ;;  %v2592_v1 = vmax.f32 %v2558_v18, 0.0 }
 0xc7c   :  { %v2562_v12 = vpop.f32.mrf.mxu0 }
 0xc7d   :  { %v2563_v19 = vadd.f32 %v2562_v12, %v4087_v40  ;;  %v2594_v41 = vmax.f32 %v2568_v8, 0.0  ;;  %v2543_v40 = vadd.f32 %v2542_v6, %v4157_v46  ;;  %v2523_v46 = vadd.f32 %v2522_v32, %v4165_v44 }
 0xc7e   :  { %v3614_v34 = vpop.f32.mrf.mxu0  ;;  %v2584_v44 = vmax.f32 %v2518_v59, 0.0 }
 0xc7f   :  { %v2578_v13 = vadd.f32 %v3614_v34, %v4061_v57  ;;  %v2553_v57 = vadd.f32 %v2552_v39, %v4110_v0  ;;  %v2593_v48 = vmax.f32 %v2563_v19, 0.0  ;;  %v2533_v0 = vadd.f32 %v2532_v20, %v4162_v61 }
 0xc80   :  { %v2572_v42 = vpop.f32.mrf.mxu0  ;;  %v2589_v63 = vmax.f32 %v2543_v40, 0.0  ;;  %v2513_v61 = vadd.f32 %v2512_v36, %v4178_v4  ;;  %v2585_v50 = vmax.f32 %v2523_v46, 0.0  ;;  %v2581_v4 = vmax.f32 %v2503_v51, 0.0 }
 0xc81   :  { %v2596_v30 = vmax.f32 %v2578_v13, 0.0  ;;  %v2573_v17 = vadd.f32 %v2572_v42, %v4059_v55  ;;  %v2548_v55 = vadd.f32 %v3605_v26, %v4124_v45  ;;  %v2591_v15 = vmax.f32 %v2553_v57, 0.0 }
 0xc82   :  { %v2528_v45 = vadd.f32 %v3599_v24, %v4180_v38  ;;  %v2587_v27 = vmax.f32 %v2533_v0, 0.0  ;;  %v2508_v38 = vadd.f32 %v4910_v9, %v4202_v3  ;;  %v2583_v16 = vmax.f32 %v2513_v61, 0.0 }
 0xc83   :  { %v2595_v49 = vmax.f32 %v2573_v17, 0.0  ;;  %3616 = vmatpush3.msra.mxu1 %v2596_v30  ;;  %v2590_v14 = vmax.f32 %v2548_v55, 0.0 }
 0xc84   :  { %3617 = vmatprep.subr.mxu1 %v4986_v23  ;;  %v2586_v11 = vmax.f32 %v2528_v45, 0.0  ;;  %v2582_v43 = vmax.f32 %v2508_v38, 0.0 }
 0xc85   :  { %3618 = vmatpush3.msra.mxu1 %v2595_v49 }
 0xc86   :  { %3619 = vmatprep.subr.mxu1 %v4986_v23 }
 0xc87   :  { %3620 = vmatpush3.msra.mxu1 %v2594_v41 }
 0xc88   :  { %3621 = vmatprep.subr.mxu1 %v4986_v23 }
 0xc89   :  { %3622 = vmatpush3.msra.mxu1 %v2593_v48 }
 0xc8a   :  { %3623 = vmatprep.subr.mxu1 %v4986_v23 }
 0xc8b   :  { %3624 = vmatpush3.msra.mxu1 %v2592_v1 }
 0xc8c   :  { %3625 = vmatprep.subr.mxu1 %v4986_v23 }
 0xc8d   :  { %3626 = vmatpush3.msra.mxu1 %v2591_v15 }
 0xc8e   :  { %3627 = vmatprep.subr.mxu1 %v4986_v23 }
 0xc8f   :  { %3628 = vmatpush3.msra.mxu1 %v2590_v14 }
 0xc90   :  { %3629 = vmatprep.subr.mxu1 %v4986_v23 }
 0xc91   :  { %3630 = vmatpush3.msra.mxu1 %v2589_v63 }
 0xc92   :  { %3631 = vmatprep.subr.mxu1 %v4986_v23 }
 0xc93   :  { %3632 = vmatpush3.msra.mxu1 %v2588_v33 }
 0xc94   :  { %3633 = vmatprep.subr.mxu1 %v4986_v23 }
 0xc95   :  { %3634 = vmatpush3.msra.mxu1 %v2587_v27 }
 0xc96   :  { %3635 = vmatprep.subr.mxu1 %v4986_v23 }
 0xc97   :  { %3636 = vmatpush3.msra.mxu1 %v2586_v11 }
 0xc98   :  { %3637 = vmatprep.subr.mxu1 %v4986_v23 }
 0xc99   :  { %3638 = vmatpush3.msra.mxu1 %v2585_v50 }
 0xc9a   :  { %3639 = vmatprep.subr.mxu1 %v4986_v23 }
 0xc9b   :  { %3640 = vmatpush3.msra.mxu1 %v2584_v44 }
 0xc9c   :  { %3641 = vmatprep.subr.mxu1 %v4986_v23 }
 0xc9d   :  { %3642 = vmatpush3.msra.mxu1 %v2583_v16 }
 0xc9e   :  { %3643 = vmatprep.subr.mxu1 %v4986_v23 }
 0xc9f   :  { %3644 = vmatpush3.msra.mxu1 %v2582_v43 }
 0xca0   :  { %3645 = vmatprep.subr.mxu1 %v4986_v23 }
 0xca1   :  { %3646 = vmatpush3.msra.mxu1 %v2581_v4 }
 0xca2   :  { %3648 = vmatmul.mubr.f32.vlgmr.msra.gmra.mxu1 %v4687_v28 }
 0xd62   :  { %v2663_v3 = vpop.f32.mrf.mxu1 }
 0xd63   :  { %v2664_v47 = vadd.f32 %v2663_v3, %v4863_v7 }
 0xd64   :  { %v3649_v22 = vpop.f32.mrf.mxu1 }
 0xd65   :  { %2668 = vst [vmem:[#allocation3 + $0x14] sm:$0xf] %v2664_v47 }
 0xd66   :  { %3755 = shalt.err (!%p3752_p4)
}
 0xd67   :  { %s3770_s29 = smov 64   ;;  %s3771_s30 = smov 4  }
 0xd68   :  { %2872 = dma.vmem_to_hbm [thread:$0]  %s2867_s27, 384, %s4963_s11, [#allocation4], %s3770_s29, %s3770_s29, %s3771_s30  }
 0xd69   :  { %3764 = dma.done.wait [#allocation4], 384  }
 0xd6a   :  { %3765 = vsyncadd [#allocation4], 4294966912 }
 0xd6b   :  { %2876 = vsyncpa [#allocation4], 1 }

</bundles_post_ra>
